<compile_context>
chip_gen: v7x
topology: tpu7x:2x2x1
jax: 0.10.0
libtpu: 0.0.40
codegen_flags: <defaults>
</compile_context>

<pallas_src>
import functools

import jax
import jax.numpy as jnp
from jax.experimental import pallas as pl
from jax.experimental.pallas import tpu as pltpu

EPS = 1e-8


# ---------------------------------------------------------------------------
# Single-pass kernel: one (b_blk, C, T_pad) tile per grid step.
# ---------------------------------------------------------------------------
def _dain_full_kernel(x_ref, wm_ref, ws_ref, wg_ref, bg_ref, o_ref, *, inv_t):
    # --- one reduction pass over the time (lane) axis ----------------------
    x = x_ref[...].astype(jnp.float32)                  # (B, C, T)
    ex = jnp.sum(x, axis=-1) * inv_t                    # (B, C)  E[x]
    ex2 = jnp.sum(x * x, axis=-1) * inv_t               # (B, C)  E[x^2]
    # `x` is not reused below; the tile is re-read from VMEM for the final
    # elementwise pass so the full tile value is not kept live across the
    # stats chain (lower vreg pressure / spill risk for large tiles).

    # --- step 1: adaptive mean  a = mean_layer(E[x]) ------------------------
    a = jnp.dot(ex, wm_ref[...], preferred_element_type=jnp.float32)   # (B, C)

    # --- step 2: adaptive scaling.
    # mean((x-a)^2) = (E[x^2] - E[x]^2) + (E[x] - a)^2  (better conditioned
    # than E[x^2]-2aE[x]+a^2; clamp the variance term against cancellation).
    var = jnp.maximum(ex2 - ex * ex, 0.0)
    std = jnp.sqrt(var + (ex - a) * (ex - a) + EPS)
    s = jnp.dot(std, ws_ref[...], preferred_element_type=jnp.float32)  # (B, C)
    s = jnp.where(s <= EPS, jnp.float32(1.0), s)
    inv_s = 1.0 / s                                      # exact recip, tiny row

    # --- step 3: gate on mean of ((x-a)/s) = (E[x]-a) * inv_s ---------------
    gate = jax.nn.sigmoid(
        jnp.dot((ex - a) * inv_s, wg_ref[...], preferred_element_type=jnp.float32)
        + bg_ref[...])                                   # (B, C)

    # --- single fused elementwise pass (re-read tile from VMEM) -------------
    scale = (gate * inv_s)[:, :, None]                   # (B, C, 1)
    shift = a[:, :, None]                                # (B, C, 1)
    o_ref[...] = ((x_ref[...].astype(jnp.float32) - shift) * scale).astype(o_ref.dtype)


# ---------------------------------------------------------------------------
# Two-phase fallback kernels (single sample too large for one tile).
# ---------------------------------------------------------------------------
def _dain_stats_kernel(x_ref, sx_ref, sxx_ref):
    @pl.when(pl.program_id(1) == 0)
    def _():
        sx_ref[...] = jnp.zeros_like(sx_ref)
        sxx_ref[...] = jnp.zeros_like(sxx_ref)
    x = x_ref[...].astype(jnp.float32)                   # (1, C, t_chunk)
    sx_ref[...] += jnp.sum(x, axis=-1, keepdims=True)    # (1, C, 1)
    sxx_ref[...] += jnp.sum(x * x, axis=-1, keepdims=True)


def _dain_apply_kernel(x_ref, shift_ref, scale_ref, o_ref):
    x = x_ref[...].astype(jnp.float32)                   # (1, C, t_chunk)
    o_ref[...] = ((x - shift_ref[...]) * scale_ref[...]).astype(o_ref.dtype)


# ---------------------------------------------------------------------------
# Tiling policy (generation-aware).
# ---------------------------------------------------------------------------
def _round_up(x, m):
    return ((x + m - 1) // m) * m


def _vmem_capacity_bytes():
    try:
        return int(pltpu.get_tpu_info().vmem_capacity_bytes)
    except Exception:
        return 64 << 20        # conservative: v7x physical VMEM per TensorCore


def _num_tensorcores():
    try:
        kind = jax.devices()[0].device_kind.lower()
        if "v7" in kind or "7x" in kind:
            return 2           # v7x: 2 TensorCores per chip
    except Exception:
        pass
    return 1                   # v5e / v6e


def _plan(n, c, t, itemsize):
    """Returns (t_pad, b_blk_or_None, t_chunk_or_None, vmem_limit_bytes)."""
    vmem_cap = _vmem_capacity_bytes()
    # Explicit scoped-VMEM limit (~3/4 of physical: ~48 MiB v7x, ~96 MiB v5e/v6e).
    # Required because default scoped limits (16 MiB v5e, 32 MiB v6e/v7x) are
    # far below what large streaming tiles need.
    vmem_limit = (vmem_cap * 3) // 4
    # Residency: x-in and out are each double-buffered (4x tile); the (C,C)
    # weights + bias have constant index maps but still reserve 2 buffers each.
    # TODO(synk): single-buffer the weight specs (pipeline_mode=pl.Buffered(1))
    # for very large C on v7x to reclaim that VMEM.
    weight_bytes = 2 * (3 * c * c + c) * 4
    budget = max(vmem_limit - weight_bytes - (2 << 20), 1 << 20)

    t_pad = _round_up(t, 128)                            # lane-dense stores
    per_sample = c * t_pad * itemsize

    if 4 * per_sample <= budget:
        # Single-pass path: biggest batch block that fits the budget.
        b_blk = max(1, min(n, budget // (4 * per_sample)))
        ncores = _num_tensorcores()
        if ncores > 1 and n > 1:
            # On multi-TC chips keep >= 2 grid steps per core so both cores
            # get work; on single-TC chips one full-problem tile is best.
            b_blk = min(b_blk, max(1, pl.cdiv(n, 2 * ncores)))
        return t_pad, int(b_blk), None, int(vmem_limit)

    # Two-phase T-chunked fallback.
    t_chunk = max(128, ((budget // (4 * c * itemsize)) // 128) * 128)
    t_chunk = min(t_chunk, t_pad)
    t_pad = _round_up(t, t_chunk)
    return t_pad, None, int(t_chunk), int(vmem_limit)


# ---------------------------------------------------------------------------
# pallas_call wrappers.
# ---------------------------------------------------------------------------
@functools.partial(jax.jit, static_argnames=("b_blk", "true_t", "vmem_limit"))
def _dain_single_pass(x, wm_t, ws_t, wg_t, bg_row, *, b_blk, true_t, vmem_limit):
    N, C, Tp = x.shape
    kernel = functools.partial(_dain_full_kernel, inv_t=1.0 / float(true_t))
    return pl.pallas_call(
        kernel,
        out_shape=jax.ShapeDtypeStruct((N, C, Tp), x.dtype),
        grid_spec=pltpu.PrefetchScalarGridSpec(
            num_scalar_prefetch=0,
            grid=(pl.cdiv(N, b_blk),),
            in_specs=[
                pl.BlockSpec((b_blk, C, Tp), lambda b: (b, 0, 0)),   # x tile
                pl.BlockSpec((C, C), lambda b: (0, 0)),              # W_mean^T
                pl.BlockSpec((C, C), lambda b: (0, 0)),              # W_scale^T
                pl.BlockSpec((C, C), lambda b: (0, 0)),              # W_gate^T
                pl.BlockSpec((1, C), lambda b: (0, 0)),              # b_gate row
            ],
            out_specs=pl.BlockSpec((b_blk, C, Tp), lambda b: (b, 0, 0)),
        ),
        compiler_params=pltpu.CompilerParams(
            dimension_semantics=("parallel",),
            vmem_limit_bytes=int(vmem_limit)),
    )(x, wm_t, ws_t, wg_t, bg_row)


@functools.partial(jax.jit, static_argnames=("t_chunk", "true_t", "vmem_limit"))
def _dain_two_phase(x, wm_t, ws_t, wg_t, bg_row, *, t_chunk, true_t, vmem_limit):
    N, C, Tp = x.shape
    nt = Tp // t_chunk

    # ---- pass 1: per-(sample, channel) sums over T chunks ------------------
    sx, sxx = pl.pallas_call(
        _dain_stats_kernel,
        out_shape=(jax.ShapeDtypeStruct((N, C, 1), jnp.float32),
                   jax.ShapeDtypeStruct((N, C, 1), jnp.float32)),
        grid_spec=pltpu.PrefetchScalarGridSpec(
            num_scalar_prefetch=0,
            grid=(N, nt),
            in_specs=[pl.BlockSpec((1, C, t_chunk), lambda b, t: (b, 0, t))],
            out_specs=(pl.BlockSpec((1, C, 1), lambda b, t: (b, 0, 0)),
                       pl.BlockSpec((1, C, 1), lambda b, t: (b, 0, 0))),
        ),
        compiler_params=pltpu.CompilerParams(
            dimension_semantics=("parallel", "arbitrary"),
            vmem_limit_bytes=int(vmem_limit)),
    )(x)

    # ---- tiny (N, C) stats chain in plain JAX -------------------------------
    inv_t = jnp.float32(1.0 / float(true_t))
    ex = sx[:, :, 0] * inv_t
    ex2 = sxx[:, :, 0] * inv_t
    a = ex @ wm_t
    var = jnp.maximum(ex2 - ex * ex, 0.0)
    std = jnp.sqrt(var + (ex - a) ** 2 + EPS)
    s = std @ ws_t
    s = jnp.where(s <= EPS, 1.0, s)
    inv_s = 1.0 / s
    gate = jax.nn.sigmoid(((ex - a) * inv_s) @ wg_t + bg_row)
    shift = a[:, :, None]                          # (N, C, 1)
    scale = (gate * inv_s)[:, :, None]             # (N, C, 1)

    # ---- pass 2: apply (x - shift) * scale per T chunk ----------------------
    return pl.pallas_call(
        _dain_apply_kernel,
        out_shape=jax.ShapeDtypeStruct((N, C, Tp), x.dtype),
        grid_spec=pltpu.PrefetchScalarGridSpec(
            num_scalar_prefetch=0,
            grid=(N, nt),
            in_specs=[pl.BlockSpec((1, C, t_chunk), lambda b, t: (b, 0, t)),
                      pl.BlockSpec((1, C, 1), lambda b, t: (b, 0, 0)),
                      pl.BlockSpec((1, C, 1), lambda b, t: (b, 0, 0))],
            out_specs=pl.BlockSpec((1, C, t_chunk), lambda b, t: (b, 0, t)),
        ),
        compiler_params=pltpu.CompilerParams(
            dimension_semantics=("parallel", "parallel"),
            vmem_limit_bytes=int(vmem_limit)),
    )(x, shift, scale)


# ---------------------------------------------------------------------------
# Public entry point.
# ---------------------------------------------------------------------------
def dain_full(x, w_mean, w_scale, w_gate, b_gate, *,
              b_blk_override=None, force_two_phase=False):
    """DAIN (mode='full') forward. x: (N, C, T) float32. Returns (N, C, T)."""
    N, C, T = x.shape
    itemsize = jnp.dtype(x.dtype).itemsize
    t_pad, b_blk, t_chunk, vmem_limit = _plan(N, C, T, itemsize)

    if force_two_phase and t_chunk is None:
        t_chunk = min(128, t_pad)          # t_pad is already a multiple of 128
    if b_blk_override is not None:
        b_blk = int(b_blk_override)

    # Only the tiny (C, C) Linear weights are transposed host-side
    # (PyTorch Linear: y = x @ W^T); x stays in its native (N, C, T) layout.
    wm_t = jnp.transpose(w_mean)
    ws_t = jnp.transpose(w_scale)
    wg_t = jnp.transpose(w_gate)
    bg_row = b_gate.reshape(1, C)

    x_pad = x if t_pad == T else jnp.pad(x, ((0, 0), (0, 0), (0, t_pad - T)))

    if force_two_phase or b_blk is None:
        out = _dain_two_phase(x_pad, wm_t, ws_t, wg_t, bg_row,
                              t_chunk=t_chunk, true_t=T, vmem_limit=vmem_limit)
    else:
        out = _dain_single_pass(x_pad, wm_t, ws_t, wg_t, bg_row,
                                b_blk=b_blk, true_t=T, vmem_limit=vmem_limit)

    return out[:, :, :T] if t_pad != T else out


def dain_full_ref(x, w_mean, w_scale, w_gate, b_gate):
    """Pure-JAX reference matching the PyTorch forward (mode='full')."""
    avg = jnp.mean(x, axis=2)
    x = x - (avg @ w_mean.T)[:, :, None]
    std = jnp.sqrt(jnp.mean(x * x, axis=2) + EPS)
    adaptive_std = std @ w_scale.T
    adaptive_std = jnp.where(adaptive_std <= EPS, 1.0, adaptive_std)
    x = x / adaptive_std[:, :, None]
    avg2 = jnp.mean(x, axis=2)
    gate = jax.nn.sigmoid(avg2 @ w_gate.T + b_gate)
    return x * gate[:, :, None]


if __name__ == "__main__":
    key = jax.random.PRNGKey(0)
    kx, kw, kb, kx2 = jax.random.split(key, 4)

    C = 32
    # Parameter init mirroring DAIN_Layer.__init__:
    #   mean_layer / scaling_layer weights = identity,
    #   gating_layer = default nn.Linear init: U(-1/sqrt(C), 1/sqrt(C)).
    w_mean = jnp.eye(C, dtype=jnp.float32)
    w_scale = jnp.eye(C, dtype=jnp.float32)
    bound = 1.0 / (C ** 0.5)
    w_gate = jax.random.uniform(kw, (C, C), jnp.float32, -bound, bound)
    b_gate = jax.random.uniform(kb, (C,), jnp.float32, -bound, bound)
    params = (w_mean, w_scale, w_gate, b_gate)

    ok = True

    # Test 1: aligned shapes -> single-pass path.
    N, T = 4, 128
    x = jax.random.normal(kx, (N, C, T), dtype=jnp.float32)
    out = jax.block_until_ready(dain_full(x, *params))
    ref = dain_full_ref(x, *params)
    ok &= bool(jnp.allclose(out, ref, rtol=1e-4, atol=1e-4))

    # Test 2: N not a multiple of the batch block and T not a multiple of 128
    # (exercises the cdiv grid / partial trailing batch block + T padding).
    N2, T2 = 3, 100
    x2 = jax.random.normal(kx2, (N2, C, T2), dtype=jnp.float32)
    out2 = jax.block_until_ready(dain_full(x2, *params, b_blk_override=2))
    ref2 = dain_full_ref(x2, *params)
    ok &= bool(jnp.allclose(out2, ref2, rtol=1e-4, atol=1e-4))

    # Test 3: force the two-phase T-chunked fallback path.
    out3 = jax.block_until_ready(dain_full(x, *params, force_two_phase=True))
    ok &= bool(jnp.allclose(out3, ref, rtol=1e-4, atol=1e-4))

    assert ok, "mismatch vs reference"
    print("KERNEL_OK")
</pallas_src>

<mosaic_0001>
module attributes {stable_mosaic.version = 11 : i64} {
  func.func @_dain_full_kernel(%arg0: i32, %arg1: memref<4x32x128xf32, #tpu.memory_space<vmem>>, %arg2: memref<32x32xf32, #tpu.memory_space<vmem>>, %arg3: memref<32x32xf32, #tpu.memory_space<vmem>>, %arg4: memref<32x32xf32, #tpu.memory_space<vmem>>, %arg5: memref<1x32xf32, #tpu.memory_space<vmem>>, %arg6: memref<4x32x128xf32, #tpu.memory_space<vmem>>) attributes {dimension_semantics = [#tpu.dimension_semantics<parallel>], iteration_bounds = array<i64: 1>, scalar_prefetch = 0 : i64, scratch_operands = 0 : i64, tpu.core_type = #tpu.core_type<tc>, window_params = [{transform_indices = @transform_0, window_bounds = array<i64: 4, 32, 128>}, {pipeline_mode = #tpu.pipeline_mode<synchronous>, transform_indices = @transform_1, window_bounds = array<i64: 32, 32>}, {pipeline_mode = #tpu.pipeline_mode<synchronous>, transform_indices = @transform_2, window_bounds = array<i64: 32, 32>}, {pipeline_mode = #tpu.pipeline_mode<synchronous>, transform_indices = @transform_3, window_bounds = array<i64: 32, 32>}, {pipeline_mode = #tpu.pipeline_mode<synchronous>, transform_indices = @transform_4, window_bounds = array<i64: 1, 32>}, {transform_indices = @transform_5, window_bounds = array<i64: 4, 32, 128>}]} {
    %c0 = arith.constant 0 : index
    %c0_0 = arith.constant 0 : index
    %c0_1 = arith.constant 0 : index
    %0 = vector.load %arg1[%c0, %c0_0, %c0_1] : memref<4x32x128xf32, #tpu.memory_space<vmem>>, vector<4x32x128xf32>
    %cst = arith.constant dense<0.000000e+00> : vector<4x32xf32>
    %1 = vector.multi_reduction <add>, %0, %cst [2] : vector<4x32x128xf32> to vector<4x32xf32>
    %cst_2 = arith.constant 7.812500e-03 : f32
    %2 = vector.broadcast %cst_2 : f32 to vector<4x32xf32>
    %3 = arith.mulf %1, %2 : vector<4x32xf32>
    %4 = arith.mulf %0, %0 : vector<4x32x128xf32>
    %cst_3 = arith.constant dense<0.000000e+00> : vector<4x32xf32>
    %5 = vector.multi_reduction <add>, %4, %cst_3 [2] : vector<4x32x128xf32> to vector<4x32xf32>
    %cst_4 = arith.constant 7.812500e-03 : f32
    %6 = vector.broadcast %cst_4 : f32 to vector<4x32xf32>
    %7 = arith.mulf %5, %6 : vector<4x32xf32>
    %c0_5 = arith.constant 0 : index
    %c0_6 = arith.constant 0 : index
    %8 = vector.load %arg2[%c0_5, %c0_6] : memref<32x32xf32, #tpu.memory_space<vmem>>, vector<32x32xf32>
    %cst_7 = arith.constant dense<0.000000e+00> : vector<4x32xf32>
    %9 = tpu.matmul %3, %8, %cst_7 {dimension_numbers = #tpu.dot_dimension_numbers<[1], [0], [0], [1], [0, 0, 1, 1], [], []>} : vector<4x32xf32>, vector<32x32xf32>, vector<4x32xf32> -> vector<4x32xf32>
    %10 = arith.mulf %3, %3 : vector<4x32xf32>
    %11 = arith.subf %7, %10 : vector<4x32xf32>
    %cst_8 = arith.constant 0.000000e+00 : f32
    %12 = vector.broadcast %cst_8 : f32 to vector<4x32xf32>
    %13 = arith.maximumf %11, %12 : vector<4x32xf32>
    %14 = arith.subf %3, %9 : vector<4x32xf32>
    %15 = arith.subf %3, %9 : vector<4x32xf32>
    %16 = arith.mulf %14, %15 : vector<4x32xf32>
    %17 = arith.addf %13, %16 : vector<4x32xf32>
    %cst_9 = arith.constant 9.99999993E-9 : f32
    %18 = vector.broadcast %cst_9 : f32 to vector<4x32xf32>
    %19 = arith.addf %17, %18 : vector<4x32xf32>
    %20 = math.sqrt %19 : vector<4x32xf32>
    %c0_10 = arith.constant 0 : index
    %c0_11 = arith.constant 0 : index
    %21 = vector.load %arg3[%c0_10, %c0_11] : memref<32x32xf32, #tpu.memory_space<vmem>>, vector<32x32xf32>
    %cst_12 = arith.constant dense<0.000000e+00> : vector<4x32xf32>
    %22 = tpu.matmul %20, %21, %cst_12 {dimension_numbers = #tpu.dot_dimension_numbers<[1], [0], [0], [1], [0, 0, 1, 1], [], []>} : vector<4x32xf32>, vector<32x32xf32>, vector<4x32xf32> -> vector<4x32xf32>
    %cst_13 = arith.constant 9.99999993E-9 : f32
    %23 = vector.broadcast %cst_13 : f32 to vector<4x32xf32>
    %24 = arith.cmpf ole, %22, %23 : vector<4x32xf32>
    %cst_14 = arith.constant 1.000000e+00 : f32
    %25 = vector.broadcast %cst_14 : f32 to vector<4x32xf32>
    %26 = arith.select %24, %25, %22 : vector<4x32xi1>, vector<4x32xf32>
    %cst_15 = arith.constant 1.000000e+00 : f32
    %27 = vector.broadcast %cst_15 : f32 to vector<4x32xf32>
    %28 = arith.divf %27, %26 : vector<4x32xf32>
    %29 = arith.subf %3, %9 : vector<4x32xf32>
    %30 = arith.mulf %29, %28 : vector<4x32xf32>
    %c0_16 = arith.constant 0 : index
    %c0_17 = arith.constant 0 : index
    %31 = vector.load %arg4[%c0_16, %c0_17] : memref<32x32xf32, #tpu.memory_space<vmem>>, vector<32x32xf32>
    %cst_18 = arith.constant dense<0.000000e+00> : vector<4x32xf32>
    %32 = tpu.matmul %30, %31, %cst_18 {dimension_numbers = #tpu.dot_dimension_numbers<[1], [0], [0], [1], [0, 0, 1, 1], [], []>} : vector<4x32xf32>, vector<32x32xf32>, vector<4x32xf32> -> vector<4x32xf32>
    %c0_19 = arith.constant 0 : index
    %c0_20 = arith.constant 0 : index
    %33 = vector.load %arg5[%c0_19, %c0_20] : memref<1x32xf32, #tpu.memory_space<vmem>>, vector<1x32xf32>
    %34 = vector.broadcast %33 : vector<1x32xf32> to vector<4x32xf32>
    %35 = arith.addf %32, %34 : vector<4x32xf32>
    %36 = arith.negf %35 : vector<4x32xf32>
    %37 = math.exp %36 : vector<4x32xf32>
    %cst_21 = arith.constant 1.000000e+00 : f32
    %38 = vector.broadcast %cst_21 : f32 to vector<4x32xf32>
    %39 = arith.addf %38, %37 : vector<4x32xf32>
    %40 = arith.divf %38, %39 : vector<4x32xf32>
    %41 = arith.mulf %40, %28 : vector<4x32xf32>
    %42 = vector.shape_cast %41 : vector<4x32xf32> to vector<4x32x1xf32>
    %43 = vector.shape_cast %9 : vector<4x32xf32> to vector<4x32x1xf32>
    %c0_22 = arith.constant 0 : index
    %c0_23 = arith.constant 0 : index
    %c0_24 = arith.constant 0 : index
    %44 = vector.load %arg1[%c0_22, %c0_23, %c0_24] : memref<4x32x128xf32, #tpu.memory_space<vmem>>, vector<4x32x128xf32>
    %45 = vector.broadcast %43 : vector<4x32x1xf32> to vector<4x32x128xf32>
    %46 = arith.subf %44, %45 : vector<4x32x128xf32>
    %47 = vector.broadcast %42 : vector<4x32x1xf32> to vector<4x32x128xf32>
    %48 = arith.mulf %46, %47 : vector<4x32x128xf32>
    %c0_25 = arith.constant 0 : index
    %c0_26 = arith.constant 0 : index
    %c0_27 = arith.constant 0 : index
    %49 = vector.load %arg6[%c0_25, %c0_26, %c0_27] : memref<4x32x128xf32, #tpu.memory_space<vmem>>, vector<4x32x128xf32>
    tpu.vector_store %arg6[%c0_25, %c0_26, %c0_27], %48 {strides = array<i32>} : memref<4x32x128xf32, #tpu.memory_space<vmem>>, vector<4x32x128xf32>,
    return
  }
  func.func @transform_0(%arg0: i32) -> (i32, i32, i32) {
    %c0_i32 = arith.constant 0 : i32
    %c0_i32_0 = arith.constant 0 : i32
    %c0_i32_1 = arith.constant 0 : i32
    return %arg0, %c0_i32, %c0_i32_0 : i32, i32, i32
  }
  func.func @transform_1(%arg0: i32) -> (i32, i32) {
    %c0_i32 = arith.constant 0 : i32
    %c0_i32_0 = arith.constant 0 : i32
    %c0_i32_1 = arith.constant 0 : i32
    return %c0_i32, %c0_i32_0 : i32, i32
  }
  func.func @transform_2(%arg0: i32) -> (i32, i32) {
    %c0_i32 = arith.constant 0 : i32
    %c0_i32_0 = arith.constant 0 : i32
    %c0_i32_1 = arith.constant 0 : i32
    return %c0_i32, %c0_i32_0 : i32, i32
  }
  func.func @transform_3(%arg0: i32) -> (i32, i32) {
    %c0_i32 = arith.constant 0 : i32
    %c0_i32_0 = arith.constant 0 : i32
    %c0_i32_1 = arith.constant 0 : i32
    return %c0_i32, %c0_i32_0 : i32, i32
  }
  func.func @transform_4(%arg0: i32) -> (i32, i32) {
    %c0_i32 = arith.constant 0 : i32
    %c0_i32_0 = arith.constant 0 : i32
    %c0_i32_1 = arith.constant 0 : i32
    return %c0_i32, %c0_i32_0 : i32, i32
  }
  func.func @transform_5(%arg0: i32) -> (i32, i32, i32) {
    %c0_i32 = arith.constant 0 : i32
    %c0_i32_0 = arith.constant 0 : i32
    %c0_i32_1 = arith.constant 0 : i32
    return %arg0, %c0_i32, %c0_i32_0 : i32, i32, i32
  }
}

</mosaic_0001>

<bundles_post_ra>
// kernel: _dain_single_pass.1
= control target key start
LH: loop header
LB: loop body
LE: loop exit
PB: predicated region body
PF: predicated region fallthrough
CT: control target
= control target key end

     0   :  { %10 = vsyncpa [#allocation3], 0  ;;  %s2464_s0 = inlined_call_operand.hbm [shape: f32[4,32,128], index: 0, kind: input, shape index: {}]   ;;  %s2465_s1 = inlined_call_operand.hbm [shape: f32[32,32], index: 1, kind: input, shape index: {}]   ;;  %s2466_s2 = inlined_call_operand.hbm [shape: f32[32,32], index: 2, kind: input, shape index: {}]   ;;  %s2467_s3 = inlined_call_operand.hbm [shape: f32[32,32], index: 3, kind: input, shape index: {}]   ;;  %s2468_s4 = inlined_call_operand.vmem [shape: f32[1,32], index: 4, kind: input, shape index: {}]   ;;  %s2469_s5 = inlined_call_operand.hbm [shape: f32[4,32,128], index: 5, kind: output, shape index: {}]  }
   0x1   :  { %11 = vsyncpa [#allocation6], 0 }
   0x2   :  { %12 = vsyncpa [#allocation9], 0 }
   0x3   :  { %13 = vsyncpa [#allocation4], 0  ;;  %s1744_s18 = smov [#allocation5]   ;;  %s1745_s20 = smov [#allocation2]  }
   0x4   :  { %s31_s19 = sshll.u32 %s1744_s18, 4  ;;  %s19_s21 = sshll.u32 %s1745_s20, 4  ;;  %s32_s19 = int_to_ptr.vmem [resolvable:$true] %s31_s19  ;;  %s1785_s21 = int_to_ptr.vmem [resolvable:$true] %s19_s21 }
   0x5   :  { %s1626_s24 = scalar_lea.hbm %s2465_s1, 512 }
   0x6   :  { %p1627_p0 = scmp.ne.s32.totalorder %s2465_s1, %s1626_s24  ;;  %p1630_p1 = scmp.lt.u32.totalorder %s1626_s24, %s2465_s1 }
   0x8   :  { %p1632_p2 = pnand %p1630_p1, %p1627_p0 }
   0xa   :  { %1635 = shalt.err (!%p1632_p2)
}
   0xb   :  { %s1636_s29 = scalar_lea.vmem %s32_s19, 512  ;;  %p1641_p4 = scmp.lt.s32.totalorder %s32_s19, %s32_s19 }
   0xc   :  { %p1637_p3 = scmp.ne.s32.totalorder %s32_s19, %s1636_s29  ;;  %p1642_p5 = scmp.lt.s32.totalorder %s1636_s29, %s1636_s29 }
   0xe   :  { %p1643_p6 = por %p1642_p5, %p1641_p4 }
  0x10   :  { %p1644_p7 = pnand %p1643_p6, %p1637_p3 }
  0x12   :  { %1647 = shalt.err (!%p1644_p7)
}
  0x13   :  { %s1746_s30 = smov 128   ;;  %s1747_s6 = smov 8  }
  0x14   :  { %37 = dma.hbm_to_vmem [thread:$0]  %s2465_s1, 512, %s32_s19, [#allocation6], %s1746_s30, %s1746_s30, %s1747_s6  }
  0x15   :  { %s1648_s11 = scalar_lea.hbm %s2464_s0, 2048 }
  0x16   :  { %p1649_p8 = scmp.ne.s32.totalorder %s2464_s0, %s1648_s11  ;;  %p1652_p9 = scmp.lt.u32.totalorder %s1648_s11, %s2464_s0 }
  0x18   :  { %p1654_p10 = pnand %p1652_p9, %p1649_p8 }
  0x1a   :  { %1657 = shalt.err (!%p1654_p10)
}
  0x1b   :  { %s1658_s16 = scalar_lea.vmem %s1785_s21, 2048  ;;  %p1663_p12 = scmp.lt.s32.totalorder %s1785_s21, %s1785_s21 }
  0x1c   :  { %p1659_p11 = scmp.ne.s32.totalorder %s1785_s21, %s1658_s16  ;;  %p1664_p13 = scmp.lt.s32.totalorder %s1658_s16, %s1658_s16 }
  0x1e   :  { %p1665_p0 = por %p1664_p13, %p1663_p12 }
  0x20   :  { %p1666_p1 = pnand %p1665_p0, %p1659_p11 }
  0x22   :  { %1669 = shalt.err (!%p1666_p1)
}
  0x23   :  { %25 = dma.hbm_to_vmem [thread:$0]  %s2464_s0, 2048, %s1785_s21, [#allocation3], %s1746_s30, %s1746_s30, %s1747_s6  }
  0x24   :  { %s1748_s18 = smov [#allocation7]   ;;  %s1749_s20 = smov [#allocation8]  }
  0x25   :  { %s43_s19 = sshll.u32 %s1748_s18, 4  ;;  %s55_s22 = sshll.u32 %s1749_s20, 4  ;;  %s44_s19 = int_to_ptr.vmem [resolvable:$true] %s43_s19  ;;  %s1822_s22 = int_to_ptr.vmem [resolvable:$true] %s55_s22 }
  0x26   :  { %s1670_s25 = scalar_lea.hbm %s2466_s2, 512 }
  0x27   :  { %p1671_p2 = scmp.ne.s32.totalorder %s2466_s2, %s1670_s25  ;;  %p1674_p3 = scmp.lt.u32.totalorder %s1670_s25, %s2466_s2 }
  0x29   :  { %p1676_p4 = pnand %p1674_p3, %p1671_p2 }
  0x2b   :  { %1679 = shalt.err (!%p1676_p4)
}
  0x2c   :  { %s1680_s0 = scalar_lea.vmem %s44_s19, 512  ;;  %p1685_p6 = scmp.lt.s32.totalorder %s44_s19, %s44_s19 }
  0x2d   :  { %p1681_p5 = scmp.ne.s32.totalorder %s44_s19, %s1680_s0  ;;  %p1686_p7 = scmp.lt.s32.totalorder %s1680_s0, %s1680_s0 }
  0x2f   :  { %p1687_p8 = por %p1686_p7, %p1685_p6 }
  0x31   :  { %p1688_p9 = pnand %p1687_p8, %p1681_p5 }
  0x33   :  { %1691 = shalt.err (!%p1688_p9)
}
  0x34   :  { %49 = dma.hbm_to_vmem [thread:$0]  %s2466_s2, 512, %s44_s19, [#allocation6], %s1746_s30, %s1746_s30, %s1747_s6  }
  0x35   :  { %s1692_s10 = scalar_lea.hbm %s2467_s3, 512 }
  0x36   :  { %p1693_p10 = scmp.ne.s32.totalorder %s2467_s3, %s1692_s10  ;;  %p1696_p11 = scmp.lt.u32.totalorder %s1692_s10, %s2467_s3 }
  0x38   :  { %p1698_p12 = pnand %p1696_p11, %p1693_p10 }
  0x3a   :  { %1701 = shalt.err (!%p1698_p12)
}
  0x3b   :  { %s1702_s15 = scalar_lea.vmem %s1822_s22, 512  ;;  %p1707_p0 = scmp.lt.s32.totalorder %s1822_s22, %s1822_s22 }
  0x3c   :  { %p1703_p13 = scmp.ne.s32.totalorder %s1822_s22, %s1702_s15  ;;  %p1708_p1 = scmp.lt.s32.totalorder %s1702_s15, %s1702_s15 }
  0x3e   :  { %p1709_p2 = por %p1708_p1, %p1707_p0 }
  0x40   :  { %p1710_p3 = pnand %p1709_p2, %p1703_p13 }
  0x42   :  { %1713 = shalt.err (!%p1710_p3)
}
  0x43   :  { %61 = dma.hbm_to_vmem [thread:$0]  %s2467_s3, 512, %s1822_s22, [#allocation9], %s1746_s30, %s1746_s30, %s1747_s6  }
  0x44   :  { %1736 = dma.done.wait [#allocation3], 2048  }
  0x45   :  { %1737 = vsyncadd [#allocation3], 4294965248 }
  0x46   :  { %1738 = dma.done.wait [#allocation6], 1024  }
  0x47   :  { %1739 = vsyncadd [#allocation6], 4294966272 }
  0x48   :  { %1740 = dma.done.wait [#allocation9], 512  }
  0x49   :  { %1741 = vsyncadd [#allocation9], 4294966784  ;;  %v80_v0 = vld [vmem:[#allocation2 + $0x20] sm:$0xff]  ;;  %v81_v2 = vld [vmem:[#allocation2 + $0x28] sm:$0xff]  ;;  %v2470_v27 = vmov 0.0|0.0   ;;  %vm1751_vm0 = vmmov 0   ;;  %v224_v46 = vlaneseq }
  0x4a   :  { %v76_v1 = vld [vmem:[#allocation2] sm:$0xff]  ;;  %100 = vadd.xlane.f32.xlu1 %v80_v0  ;;  %v77_v3 = vld [vmem:[#allocation2 + $0x8] sm:$0xff]  ;;  %v82_v4 = vld [vmem:[#allocation2 + $0x30] sm:$0xff]  ;;  %v145_v18 = vmul.f32 %v81_v2, %v81_v2  ;;  %v144_v19 = vmul.f32 %v80_v0, %v80_v0  ;;  %1541 = vmatprep.subr.bf16.mxu0 %v2470_v27  ;;  %v1752_v35 = vmov 0.0   ;;  %vm235_vm1 = vcmask 130112  }
  0x4b   :  { %92 = vadd.xlane.f32.xlu0 %v76_v1  ;;  %v78_v5 = vld [vmem:[#allocation2 + $0x10] sm:$0xff]  ;;  %v85_v6 = vld [vmem:[#allocation2 + $0x48] sm:$0xff]  ;;  %v84_v7 = vld [vmem:[#allocation2 + $0x40] sm:$0xff]  ;;  %v141_v16 = vmul.f32 %v77_v3, %v77_v3  ;;  %v140_v17 = vmul.f32 %v76_v1, %v76_v1  ;;  %v146_v20 = vmul.f32 %v82_v4, %v82_v4  ;;  %1547 = vmatprep.subr.bf16.mxu1 %v2470_v27  ;;  %v225_v49 = vand.u32 127, %v224_v46 }
  0x4c   :  { %v83_v8 = vld [vmem:[#allocation2 + $0x38] sm:$0xff]  ;;  %v88_v10 = vld [vmem:[#allocation2 + $0x60] sm:$0xff]  ;;  %v86_v11 = vld [vmem:[#allocation2 + $0x50] sm:$0xff]  ;;  %v142_v21 = vmul.f32 %v78_v5, %v78_v5  ;;  %v149_v24 = vmul.f32 %v85_v6, %v85_v6  ;;  %v148_v25 = vmul.f32 %v84_v7, %v84_v7  ;;  %1516 = vmatprep.mubr.msk.f32.mxu0 %vm1751_vm0, %v1752_v35  ;;  %1527 = vmatprep.mubr.msk.f32.mxu1 %vm1751_vm0, %v1752_v35  ;;  %v1867_v50 = vshrl.u32 %v224_v46, 7 }
  0x4d   :  { %v79_v9 = vld [vmem:[#allocation2 + $0x18] sm:$0xff]  ;;  %v89_v13 = vld [vmem:[#allocation2 + $0x68] sm:$0xff]  ;;  %v90_v15 = vld [vmem:[#allocation2 + $0x70] sm:$0xff]  ;;  %v147_v30 = vmul.f32 %v83_v8, %v83_v8  ;;  %v152_v33 = vmul.f32 %v88_v10, %v88_v10  ;;  %v150_v34 = vmul.f32 %v86_v11, %v86_v11  ;;  %v230_v51 = vadd.s32 4294967288, %v225_v49 }
  0x4e   :  { %102 = vadd.xlane.f32.xlu1 %v81_v2  ;;  %v87_v12 = vld [vmem:[#allocation2 + $0x58] sm:$0xff]  ;;  %v204_v22 = vld [vmem:[#allocation5] sm:$0xff]  ;;  %v205_v23 = vld [vmem:[#allocation5 + $0x8] sm:$0xff]  ;;  %v143_v31 = vmul.f32 %v79_v9, %v79_v9  ;;  %v153_v37 = vmul.f32 %v89_v13, %v89_v13  ;;  %v154_v39 = vmul.f32 %v90_v15, %v90_v15  ;;  %v237_v52 = vadd.s32 4294967280, %v225_v49 }
  0x4f   :  { %94 = vadd.xlane.f32.xlu0 %v77_v3  ;;  %v91_v14 = vld [vmem:[#allocation2 + $0x78] sm:$0xff]  ;;  %v1542_v26 = vpack.c.bf16 %v205_v23, %v204_v22  ;;  %v206_v28 = vld [vmem:[#allocation5 + $0x10] sm:$0xff]  ;;  %v151_v36 = vmul.f32 %v87_v12, %v87_v12  ;;  %v1870_v55 = vsub.s32 %v225_v49, %v1867_v50  ;;  %v244_v56 = vadd.s32 4294967272, %v225_v49 }
  0x50   :  { %v207_v29 = vld [vmem:[#allocation5 + $0x18] sm:$0xff]  ;;  %v155_v38 = vmul.f32 %v91_v14, %v91_v14  ;;  %v1875_v58 = vsub.s32 %v230_v51, %v1867_v50  ;;  %v1880_v60 = vsub.s32 %v237_v52, %v1867_v50  ;;  %vm242_vm2 = vcmask 195712  }
  0x51   :  { %1543 = vmatpush3.bf16.msra.mxu0 %v1542_v26  ;;  %v1545_v32 = vpack.c.bf16 %v207_v29, %v206_v28  ;;  %vm249_vm3 = vcmask 261312   ;;  %vm308_vm4 = vcmask 1041409   ;;  %vm310_vm5 = vcmask 1042434  }
  0x52   :  { %104 = vadd.xlane.f32.xlu1 %v82_v4  ;;  %1544 = vmatprep.subr.bf16.mxu0 %v2470_v27  ;;  %vm312_vm6 = vcmask 1043459   ;;  %vm2480_vm7 = vcmask 261120   ;;  %v1964_v52 = vsub.s32 0, %v1867_v50 }
  0x53   :  { %96 = vadd.xlane.f32.xlu0 %v78_v5  ;;  %v1895_v5 = vsub.s32 %v244_v56, %v1867_v50  ;;  %v1970_v56 = vsub.s32 1, %v1867_v50 }
  0x55   :  { %1546 = vmatpush3.bf16.msra.mxu0 %v1545_v32 }
  0x56   :  { %110 = vadd.xlane.f32.xlu1 %v85_v6  ;;  %1553 = vmatprep.subr.bf16.mxu0 %v2470_v27 }
  0x57   :  { %108 = vadd.xlane.f32.xlu0 %v84_v7 }
  0x5a   :  { %106 = vadd.xlane.f32.xlu1 %v83_v8 }
  0x5b   :  { %98 = vadd.xlane.f32.xlu0 %v79_v9 }
  0x5e   :  { %116 = vadd.xlane.f32.xlu1 %v88_v10 }
  0x5f   :  { %112 = vadd.xlane.f32.xlu0 %v86_v11 }
  0x62   :  { %114 = vadd.xlane.f32.xlu1 %v87_v12 }
  0x63   :  { %118 = vadd.xlane.f32.xlu0 %v89_v13 }
  0x66   :  { %122 = vadd.xlane.f32.xlu1 %v91_v14 }
  0x67   :  { %120 = vadd.xlane.f32.xlu0 %v90_v15 }
  0x6a   :  { %158 = vadd.xlane.f32.xlu1 %v141_v16 }
  0x6b   :  { %156 = vadd.xlane.f32.xlu0 %v140_v17 }
  0x6e   :  { %166 = vadd.xlane.f32.xlu1 %v145_v18 }
  0x6f   :  { %164 = vadd.xlane.f32.xlu0 %v144_v19 }
  0x72   :  { %168 = vadd.xlane.f32.xlu1 %v146_v20 }
  0x73   :  { %160 = vadd.xlane.f32.xlu0 %v142_v21 }
  0x76   :  { %174 = vadd.xlane.f32.xlu1 %v149_v24 }
  0x77   :  { %172 = vadd.xlane.f32.xlu0 %v148_v25 }
  0x7a   :  { %170 = vadd.xlane.f32.xlu1 %v147_v30 }
  0x7b   :  { %162 = vadd.xlane.f32.xlu0 %v143_v31 }
  0x7e   :  { %180 = vadd.xlane.f32.xlu1 %v152_v33 }
  0x7f   :  { %176 = vadd.xlane.f32.xlu0 %v150_v34 }
  0x82   :  { %178 = vadd.xlane.f32.xlu1 %v151_v36 }
  0x83   :  { %182 = vadd.xlane.f32.xlu0 %v153_v37 }
  0x86   :  { %186 = vadd.xlane.f32.xlu1 %v155_v38 }
  0x87   :  { %184 = vadd.xlane.f32.xlu0 %v154_v39 }
  0xd7   :  { %v101_v40 = vpop.xlane.xlu1 %100 }
  0xd8   :  { %v93_v41 = vpop.xlane.xlu0 %92  ;;  %v1872_v57 = vmul.f32 0.0078125, %v101_v40 }
  0xd9   :  { %v1882_v61 = vmul.f32 0.0078125, %v93_v41 }
  0xda   :  { %v254_v9 = vrot.slane %v1872_v57, %v1870_v55 }
  0xdb   :  { %v103_v42 = vpop.xlane.xlu1 %102  ;;  %v229_v11 = vrot.slane %v1882_v61, %v1870_v55 }
  0xdc   :  { %v95_v43 = vpop.xlane.xlu0 %94  ;;  %v1877_v59 = vmul.f32 0.0078125, %v103_v42 }
  0xdd   :  { %v1884_v62 = vmul.f32 0.0078125, %v95_v43 }
  0xde   :  { %v258_v10 = vrot.slane %v1877_v59, %v1875_v58 }
  0xdf   :  { %v105_v44 = vpop.xlane.xlu1 %104  ;;  %v234_v12 = vrot.slane %v1884_v62, %v1875_v58 }
  0xe0   :  { %v97_v45 = vpop.xlane.xlu0 %96  ;;  %v1886_v63 = vmul.f32 0.0078125, %v105_v44  ;;  %v259_v25 = vsel %vm235_vm1, %v258_v10, %v254_v9  ;;  %v1753_v10 = vmov 0  }
  0xe1   :  { %v1888_v0 = vmul.f32 0.0078125, %v97_v45  ;;  %v236_v28 = vsel %vm235_vm1, %v234_v12, %v229_v11  ;;  %1571 = vset.pattern.permute.xlu1 %v1753_v10  ;;  %1570 = vset.pattern.permute.xlu0 %v1753_v10  ;;  %v1990_v11 = vsub.s32 3, %v1867_v50 }
  0xe2   :  { %v263_v13 = vrot.slane %v1886_v63, %v1880_v60 }
  0xe3   :  { %v111_v47 = vpop.xlane.xlu1 %110  ;;  %v241_v14 = vrot.slane %v1888_v0, %v1880_v60 }
  0xe4   :  { %v109_v48 = vpop.xlane.xlu0 %108  ;;  %v1890_v3 = vmul.f32 0.0078125, %v111_v47  ;;  %v264_v29 = vsel %vm242_vm2, %v263_v13, %v259_v25 }
  0xe5   :  { %v1892_v4 = vmul.f32 0.0078125, %v109_v48  ;;  %v243_v33 = vsel %vm242_vm2, %v241_v14, %v236_v28 }
  0xe6   :  { %v277_v17 = vrot.slane %v1890_v3, %v1875_v58 }
  0xe7   :  { %v107_v53 = vpop.xlane.xlu1 %106  ;;  %v273_v18 = vrot.slane %v1892_v4, %v1870_v55 }
  0xe8   :  { %v99_v54 = vpop.xlane.xlu0 %98  ;;  %v1897_v6 = vmul.f32 0.0078125, %v107_v53 }
  0xe9   :  { %v1899_v7 = vmul.f32 0.0078125, %v99_v54  ;;  %v278_v34 = vsel %vm235_vm1, %v277_v17, %v273_v18 }
  0xea   :  { %v268_v21 = vrot.slane %v1897_v6, %v1895_v5 }
  0xeb   :  { %v117_v1 = vpop.xlane.xlu1 %116  ;;  %v248_v22 = vrot.slane %v1899_v7, %v1895_v5  ;;  %v390_v10 = vmul.f32 %v1899_v7, %v1899_v7 }
  0xec   :  { %v113_v2 = vpop.xlane.xlu0 %112  ;;  %v1927_v23 = vmul.f32 0.0078125, %v117_v1  ;;  %v269_v40 = vsel %vm249_vm3, %v268_v21, %v264_v29 }
  0xed   :  { %v1901_v8 = vmul.f32 0.0078125, %v113_v2  ;;  %v250_v39 = vsel %vm249_vm3, %v248_v22, %v243_v33  ;;  %v392_v33 = vmul.f32 %v1877_v59, %v1877_v59 }
  0xee   :  { %v292_v38 = vrot.slane %v1927_v23, %v1870_v55  ;;  %v309_v47 = vsel %vm308_vm4, %v269_v40, %v250_v39 }
  0xef   :  { %v115_v15 = vpop.xlane.xlu1 %114  ;;  %v282_v24 = vrot.slane %v1901_v8, %v1880_v60 }
  0xf0   :  { %v119_v16 = vpop.xlane.xlu0 %118  ;;  %v1919_v19 = vmul.f32 0.0078125, %v115_v15 }
  0xf1   :  { %v1921_v20 = vmul.f32 0.0078125, %v119_v16  ;;  %v283_v41 = vsel %vm242_vm2, %v282_v24, %v278_v34  ;;  %v391_v34 = vmul.f32 %v1872_v57, %v1872_v57 }
  0xf2   :  { %v287_v26 = vrot.slane %v1919_v19, %v1895_v5 }
  0xf3   :  { %v296_v30 = vrot.slane %v1921_v20, %v1875_v58  ;;  %v123_v31 = vpop.xlane.xlu1 %122 }
  0xf4   :  { %v121_v32 = vpop.xlane.xlu0 %120  ;;  %v1940_v36 = vmul.f32 0.0078125, %v123_v31  ;;  %v288_v44 = vsel %vm249_vm3, %v287_v26, %v283_v41  ;;  %v393_v41 = vmul.f32 %v1886_v63, %v1886_v63 }
  0xf5   :  { %v1942_v37 = vmul.f32 0.0078125, %v121_v32  ;;  %v297_v45 = vsel %vm235_vm1, %v296_v30, %v292_v38  ;;  %v311_v49 = vsel %vm310_vm5, %v288_v44, %v309_v47  ;;  %v387_v30 = vmul.f32 %v1882_v61, %v1882_v61 }
  0xf6   :  { %v306_v42 = vrot.slane %v1940_v36, %v1895_v5  ;;  %v388_v32 = vmul.f32 %v1884_v62, %v1884_v62  ;;  %v395_v47 = vmul.f32 %v1892_v4, %v1892_v4 }
  0xf7   :  { %v301_v43 = vrot.slane %v1942_v37, %v1880_v60 }
  0xf8   :  { %v157_v13 = vpop.xlane.xlu0 %156 }
  0xf9   :  { %v302_v46 = vsel %vm242_vm2, %v301_v43, %v297_v45  ;;  %v188_v38 = vmul.f32 0.0078125, %v157_v13  ;;  %v389_v43 = vmul.f32 %v1888_v0, %v1888_v0  ;;  %v396_v45 = vmul.f32 %v1890_v3, %v1890_v3 }
  0xfa   :  { %v307_v48 = vsel %vm249_vm3, %v306_v42, %v302_v46  ;;  %v2029_v13 = vmul.f32 %v1901_v8, %v1901_v8 }
  0xfb   :  { %v313_v51 = vsel %vm312_vm6, %v307_v48, %v311_v49  ;;  %v394_v49 = vmul.f32 %v1897_v6, %v1897_v6 }
  0xfc   :  { %1517 = vmatmul.mubr.msk.f32.vlgmr.msra.gmra.mrb[0].mxu0 %vm2480_vm7, %v313_v51  ;;  %v165_v15 = vpop.xlane.xlu0 %164 }
  0xfd   :  { %1538 = vmatprep.mubr.msk.f32.mxu0 %vm1751_vm0, %v1752_v35  ;;  %v1978_v35 = vsub.s32 2, %v1867_v50  ;;  %v159_v50 = vpop.xlane.xlu1 %158  ;;  %v192_v40 = vmul.f32 0.0078125, %v165_v15 }
  0xfe   :  { %v189_v31 = vmul.f32 0.0078125, %v159_v50  ;;  %v2025_v50 = vmul.f32 %v1927_v23, %v1927_v23 }
 0x100   :  { %v161_v17 = vpop.xlane.xlu0 %160 }
 0x101   :  { %v167_v14 = vpop.xlane.xlu1 %166  ;;  %v190_v44 = vmul.f32 0.0078125, %v161_v17 }
 0x102   :  { %v193_v39 = vmul.f32 0.0078125, %v167_v14  ;;  %v403_v14 = vsub.f32 %v188_v38, %v387_v30 }
 0x104   :  { %v173_v21 = vpop.xlane.xlu0 %172  ;;  %v408_v15 = vsub.f32 %v193_v39, %v392_v33 }
 0x105   :  { %v169_v16 = vpop.xlane.xlu1 %168  ;;  %v196_v48 = vmul.f32 0.0078125, %v173_v21  ;;  %v405_v21 = vsub.f32 %v190_v44, %v389_v43 }
 0x106   :  { %v194_v42 = vmul.f32 0.0078125, %v169_v16  ;;  %v407_v16 = vsub.f32 %v192_v40, %v391_v34  ;;  %v2045_v34 = vmul.f32 %v1942_v37, %v1942_v37  ;;  %v419_v40 = vmax.f32 %v403_v14, 0.0 }
 0x107   :  { %v421_v44 = vmax.f32 %v405_v21, 0.0 }
 0x108   :  { %v163_v24 = vpop.xlane.xlu0 %162 }
 0x109   :  { %v175_v18 = vpop.xlane.xlu1 %174 }
 0x10a   :  { %v197_v46 = vmul.f32 0.0078125, %v175_v18  ;;  %v409_v18 = vsub.f32 %v194_v42, %v393_v41  ;;  %v424_v41 = vmax.f32 %v408_v15, 0.0 }
 0x10c   :  { %v177_v26 = vpop.xlane.xlu0 %176  ;;  %v412_v27 = vsub.f32 %v197_v46, %v396_v45  ;;  %v2053_v43 = vmax.f32 %v409_v18, 0.0 }
 0x10d   :  { %v171_v22 = vpop.xlane.xlu1 %170  ;;  %v198_v18 = vmul.f32 0.0078125, %v177_v26 }
 0x10e   :  { %v195_v17 = vmul.f32 0.0078125, %v171_v22 }
 0x110   :  { %v183_v29 = vpop.xlane.xlu0 %182  ;;  %v410_v42 = vsub.f32 %v195_v17, %v394_v49 }
 0x111   :  { %v181_v25 = vpop.xlane.xlu1 %180 }
 0x112   :  { %v2067_v17 = vmax.f32 %v410_v42, 0.0  ;;  %v413_v42 = vsub.f32 %v198_v18, %v2029_v13 }
 0x115   :  { %v179_v28 = vpop.xlane.xlu1 %178 }
 0x116   :  { %v199_v21 = vmul.f32 0.0078125, %v179_v28 }
 0x119   :  { %v187_v51 = vpop.xlane.xlu1 %186 }
 0x1cf   :  { %v383_v53 = vpop.f32.mrb[0].mxu0 }
 0x1d0   :  { %v1967_v54 = vrot.slane %v383_v53, %v1964_v52  ;;  %v1518_v1 = vpop.f32.mrb[1].mxu0  ;;  %v1975_v2 = vrot.slane %v383_v53, %v1970_v56  ;;  %v1983_v9 = vrot.slane %v383_v53, %v1978_v35  ;;  %v1995_v12 = vrot.slane %v383_v53, %v1990_v11  ;;  %v185_v53 = vpop.xlane.xlu0 %184 }
 0x1d1   :  { %v404_v1 = vsub.f32 %v189_v31, %v388_v32  ;;  %v2033_v31 = vmul.f32 %v1919_v19, %v1919_v19  ;;  %v2037_v32 = vmul.f32 %v1921_v20, %v1921_v20 }
 0x1d2   :  { %2481 = vst [vmem:[#allocation15_spill] sm:$0xff] %v1967_v54  ;;  %445 = vbcast.lane.b32.xlu1 %v1967_v54, 264  ;;  %441 = vbcast.lane.b32.xlu0 %v1967_v54, 256  ;;  %2482 = vst [vmem:[#allocation16_spill] sm:$0xff] %v1975_v2 }
 0x1d3   :  { %2483 = vst [vmem:[#allocation17_spill] sm:$0xff] %v1983_v9  ;;  %2484 = vst [vmem:[#allocation18_spill] sm:$0xff] %v1995_v12  ;;  %v420_v22 = vmax.f32 %v404_v1, 0.0  ;;  %v200_v1 = vmul.f32 0.0078125, %v181_v25 }
 0x1d6   :  { %460 = vbcast.lane.b32.xlu1 %v1975_v2, 256  ;;  %449 = vbcast.lane.b32.xlu0 %v1967_v54, 272 }
 0x1da   :  { %464 = vbcast.lane.b32.xlu1 %v1975_v2, 264  ;;  %479 = vbcast.lane.b32.xlu0 %v1983_v9, 256 }
 0x1de   :  { %468 = vbcast.lane.b32.xlu1 %v1975_v2, 272  ;;  %453 = vbcast.lane.b32.xlu0 %v1967_v54, 280 }
 0x1e2   :  { %483 = vbcast.lane.b32.xlu1 %v1983_v9, 264  ;;  %487 = vbcast.lane.b32.xlu0 %v1983_v9, 272 }
 0x1e6   :  { %472 = vbcast.lane.b32.xlu1 %v1975_v2, 280  ;;  %502 = vbcast.lane.b32.xlu0 %v1995_v12, 264  ;;  %v2041_v2 = vmul.f32 %v1940_v36, %v1940_v36 }
 0x1ea   :  { %498 = vbcast.lane.b32.xlu1 %v1995_v12, 256  ;;  %506 = vbcast.lane.b32.xlu0 %v1995_v12, 272 }
 0x1ee   :  { %491 = vbcast.lane.b32.xlu1 %v1983_v9, 280  ;;  %v191_v9 = vmul.f32 0.0078125, %v163_v24  ;;  %v423_v24 = vmax.f32 %v407_v16, 0.0 }
 0x1f2   :  { %510 = vbcast.lane.b32.xlu1 %v1995_v12, 280  ;;  %v411_v12 = vsub.f32 %v196_v48, %v395_v47  ;;  %v2059_v47 = vmax.f32 %v412_v27, 0.0  ;;  %v406_v48 = vsub.f32 %v191_v9, %v390_v10  ;;  %v203_v27 = vmul.f32 0.0078125, %v187_v51 }
 0x1f3   :  { %v202_v10 = vmul.f32 0.0078125, %v185_v53 }
 0x1f4   :  { %v422_v25 = vmax.f32 %v406_v48, 0.0  ;;  %v418_v53 = vsub.f32 %v203_v27, %v2041_v2 }
 0x1f5   :  { %v417_v13 = vsub.f32 %v202_v10, %v2045_v34 }
 0x1f6   :  { %v2114_v34 = vmax.f32 %v418_v53, 0.0 }
 0x244   :  { %v446_v30 = vpop.permute.xlu1 %445  ;;  %v442_v33 = vpop.permute.xlu0 %441 }
 0x245   :  { %v2048_v38 = vsub.f32 %v1884_v62, %v446_v30  ;;  %v2051_v39 = vsub.f32 %v1882_v61, %v442_v33  ;;  %v427_v62 = vmax.f32 %v411_v12, 0.0  ;;  %v201_v33 = vmul.f32 0.0078125, %v183_v29 }
 0x247   :  { %v545_v45 = vmul.f32 %v2048_v38, %v2048_v38  ;;  %v544_v46 = vmul.f32 %v2051_v39, %v2051_v39 }
 0x248   :  { %v461_v61 = vpop.permute.xlu1 %460  ;;  %v450_v30 = vpop.permute.xlu0 %449 }
 0x249   :  { %v561_v14 = vadd.f32 %v545_v45, %v420_v22  ;;  %v560_v15 = vadd.f32 %v544_v46, %v419_v40  ;;  %v2062_v49 = vsub.f32 %v1872_v57, %v461_v61  ;;  %v2065_v16 = vsub.f32 %v1888_v0, %v450_v30 }
 0x24a   :  { %v415_v57 = vsub.f32 %v200_v1, %v2025_v50  ;;  %v414_v45 = vsub.f32 %v199_v21, %v2033_v31  ;;  %v416_v46 = vsub.f32 %v201_v33, %v2037_v32  ;;  %v2107_v30 = vmax.f32 %v413_v42, 0.0 }
 0x24b   :  { %v2069_v54 = vadd.f32 1e-08, %v561_v14  ;;  %v548_v9 = vmul.f32 %v2062_v49, %v2062_v49  ;;  %v546_v12 = vmul.f32 %v2065_v16, %v2065_v16  ;;  %v2076_v0 = vadd.f32 1e-08, %v560_v15 }
 0x24c   :  { %v465_v22 = vpop.permute.xlu1 %464  ;;  %v480_v40 = vpop.permute.xlu0 %479  ;;  %v2109_v14 = vmax.f32 %v414_v45, 0.0  ;;  %v2111_v15 = vmax.f32 %v416_v46, 0.0 }
 0x24d   :  { %v564_v26 = vadd.f32 %v548_v9, %v423_v24  ;;  %v562_v28 = vadd.f32 %v546_v12, %v421_v44  ;;  %v2079_v29 = vsub.f32 %v1877_v59, %v465_v22  ;;  %v2082_v51 = vsub.f32 %v1892_v4, %v480_v40 }
 0x24e   :  { %1572 = vrsqrt.f32 %v2069_v54  ;;  %v2095_v4 = vmax.f32 %v415_v57, 0.0  ;;  %vm601_vm8 = vcmp.eq.f32.partialorder %v2069_v54, inf  ;;  %vm603_vm9 = vcmp.eq.f32.partialorder %v2069_v54, 0.0 }
 0x24f   :  { %v2089_v50 = vadd.f32 1e-08, %v564_v26  ;;  %v549_v24 = vmul.f32 %v2079_v29, %v2079_v29  ;;  %v552_v59 = vmul.f32 %v2082_v51, %v2082_v51  ;;  %v2098_v44 = vadd.f32 1e-08, %v562_v28 }
 0x250   :  { %v469_v31 = vpop.permute.xlu1 %468  ;;  %v454_v32 = vpop.permute.xlu0 %453  ;;  %1574 = vrsqrt.f32 %v2076_v0  ;;  %v604_v57 = vand.u32 2147483648, %v2069_v54  ;;  %vm594_vm10 = vcmp.eq.f32.partialorder %v2076_v0, inf  ;;  %vm596_vm11 = vcmp.eq.f32.partialorder %v2076_v0, 0.0 }
 0x251   :  { %v565_v48 = vadd.f32 %v549_v24, %v424_v41  ;;  %v568_v2 = vadd.f32 %v552_v59, %v427_v62  ;;  %v2102_v1 = vsub.f32 %v1886_v63, %v469_v31  ;;  %v2105_v61 = vsub.f32 %v1899_v7, %v454_v32 }
 0x252   :  { %1576 = vrsqrt.f32 %v2089_v50  ;;  %v2122_v7 = vmax.f32 %v417_v13, 0.0  ;;  %vm622_vm12 = vcmp.eq.f32.partialorder %v2089_v50, inf  ;;  %vm624_vm13 = vcmp.eq.f32.partialorder %v2089_v50, 0.0 }
 0x253   :  { %v2116_v18 = vadd.f32 1e-08, %v565_v48  ;;  %v550_v41 = vmul.f32 %v2102_v1, %v2102_v1  ;;  %v547_v63 = vmul.f32 %v2105_v61, %v2105_v61  ;;  %v2124_v62 = vadd.f32 1e-08, %v568_v2 }
 0x254   :  { %v484_v21 = vpop.permute.xlu1 %483  ;;  %v488_v33 = vpop.permute.xlu0 %487  ;;  %1578 = vrsqrt.f32 %v2098_v44  ;;  %v625_v46 = vand.u32 2147483648, %v2089_v50  ;;  %vm608_vm14 = vcmp.eq.f32.partialorder %v2098_v44, inf  ;;  %vm610_vm7 = vcmp.eq.f32.partialorder %v2098_v44, 0.0 }
 0x255   :  { %v566_v27 = vadd.f32 %v550_v41, %v2053_v43  ;;  %v563_v9 = vadd.f32 %v547_v63, %v422_v25  ;;  %v2130_v12 = vsub.f32 %v1890_v3, %v484_v21  ;;  %1580 = vrsqrt.f32 %v2116_v18 }
 0x256   :  { %v597_v43 = vand.u32 2147483648, %v2076_v0  ;;  %v2146_v40 = vsub.f32 %v1901_v8, %v488_v33  ;;  %1582 = vrsqrt.f32 %v2124_v62  ;;  %vm629_vm15 = vcmp.eq.f32.partialorder %v2116_v18, inf }
 0x257   :  { %v2137_v10 = vadd.f32 1e-08, %v566_v27  ;;  %v553_v22 = vmul.f32 %v2130_v12, %v2130_v12  ;;  %v2143_v25 = vadd.f32 1e-08, %v563_v9  ;;  %v611_v8 = vand.u32 2147483648, %v2098_v44 }
 0x258   :  { %v1573_v3 = vpop.eup %1572  ;;  %v473_v26 = vpop.permute.xlu1 %472  ;;  %vm631_vm0 = vcmp.eq.f32.partialorder %v2116_v18, 0.0  ;;  %v554_v31 = vmul.f32 %v2146_v40, %v2146_v40  ;;  %v632_v33 = vand.u32 2147483648, %v2116_v18 }
 0x259   :  { %v503_v28 = vpop.permute.xlu0 %502  ;;  %v569_v42 = vadd.f32 %v553_v22, %v2059_v47  ;;  %v2152_v45 = vsub.f32 %v1897_v6, %v473_v26  ;;  %v600_v24 = vmul.f32 %v1573_v3, %v2069_v54  ;;  %1584 = vrsqrt.f32 %v2137_v10 }
 0x25a   :  { %v1575_v53 = vpop.eup %1574  ;;  %v2165_v6 = vsub.f32 %v1921_v20, %v503_v28  ;;  %1586 = vrsqrt.f32 %v2143_v25  ;;  %v570_v26 = vadd.f32 %v554_v31, %v2107_v30 }
 0x25b   :  { %v2160_v59 = vadd.f32 1e-08, %v569_v42  ;;  %v551_v47 = vmul.f32 %v2152_v45, %v2152_v45  ;;  %v602_v32 = vsel %vm601_vm8, %v2069_v54, %v600_v24  ;;  %v593_v2 = vmul.f32 %v1575_v53, %v2076_v0 }
 0x25c   :  { %v1577_v13 = vpop.eup %1576  ;;  %v499_v48 = vpop.permute.xlu1 %498  ;;  %v605_v63 = vsel %vm603_vm9, %v604_v57, %v602_v32  ;;  %v557_v54 = vmul.f32 %v2165_v6, %v2165_v6  ;;  %vm650_vm8 = vcmp.eq.f32.partialorder %v2124_v62, inf  ;;  %vm652_vm9 = vcmp.eq.f32.partialorder %v2124_v62, 0.0 }
 0x25d   :  { %v507_v41 = vpop.permute.xlu0 %506  ;;  %v567_v20 = vadd.f32 %v551_v47, %v2067_v17  ;;  %v2180_v21 = vsub.f32 %v1927_v23, %v499_v48  ;;  %728 = vperm.xlu1 %1571, %v605_v63   ;;  %v595_v9 = vsel %vm594_vm10, %v2076_v0, %v593_v2  ;;  %v621_v3 = vmul.f32 %v1577_v13, %v2089_v50 }
 0x25e   :  { %v1579_v27 = vpop.eup %1578  ;;  %v2187_v22 = vsub.f32 %v1942_v37, %v507_v41  ;;  %1588 = vrsqrt.f32 %v2160_v59  ;;  %v598_v17 = vsel %vm596_vm11, %v597_v43, %v595_v9  ;;  %v653_v53 = vand.u32 2147483648, %v2124_v62 }
 0x25f   :  { %v556_v23 = vmul.f32 %v2180_v21, %v2180_v21  ;;  %v1581_v57 = vpop.eup %1580  ;;  %725 = vperm.xlu0 %1570, %v598_v17   ;;  %v623_v28 = vsel %vm622_vm12, %v2089_v50, %v621_v3  ;;  %v607_v42 = vmul.f32 %v1579_v27, %v2098_v44  ;;  %vm636_vm10 = vcmp.eq.f32.partialorder %v2137_v10, inf }
 0x260   :  { %v492_v37 = vpop.permute.xlu1 %491  ;;  %v626_v43 = vsel %vm624_vm13, %v625_v46, %v623_v28  ;;  %v628_v30 = vmul.f32 %v1581_v57, %v2116_v18  ;;  %v1583_v24 = vpop.eup %1582  ;;  %v2212_v47 = vadd.f32 1e-08, %v567_v20  ;;  %v558_v31 = vmul.f32 %v2187_v22, %v2187_v22 }
 0x261   :  { %v2206_v0 = vsub.f32 %v1919_v19, %v492_v37  ;;  %v572_v13 = vadd.f32 %v556_v23, %v2095_v4  ;;  %737 = vperm.xlu1 %1571, %v626_v43   ;;  %v609_v19 = vsel %vm608_vm14, %v2098_v44, %v607_v42  ;;  %v573_v50 = vadd.f32 %v557_v54, %v2111_v15 }
 0x262   :  { %v630_v32 = vsel %vm629_vm15, %v2116_v18, %v628_v30  ;;  %vm638_vm11 = vcmp.eq.f32.partialorder %v2137_v10, 0.0  ;;  %v2227_v48 = vadd.f32 1e-08, %v570_v26  ;;  %v639_v20 = vand.u32 2147483648, %v2137_v10 }
 0x263   :  { %v555_v46 = vmul.f32 %v2206_v0, %v2206_v0  ;;  %v1585_v4 = vpop.eup %1584  ;;  %v633_v41 = vsel %vm631_vm0, %v632_v33, %v630_v32  ;;  %v649_v15 = vmul.f32 %v1583_v24, %v2124_v62  ;;  %v612_v9 = vsel %vm610_vm7, %v611_v8, %v609_v19 }
 0x264   :  { %v511_v2 = vpop.permute.xlu1 %510  ;;  %740 = vperm.xlu0 %1570, %v633_v41   ;;  %v635_v3 = vmul.f32 %v1585_v4, %v2137_v10  ;;  %v1587_v54 = vpop.eup %1586  ;;  %v2240_v23 = vadd.f32 1e-08, %v572_v13  ;;  %v574_v18 = vadd.f32 %v558_v31, %v2122_v7  ;;  %1590 = vrsqrt.f32 %v2212_v47 }
 0x265   :  { %v571_v63 = vadd.f32 %v555_v46, %v2109_v14  ;;  %v2235_v27 = vsub.f32 %v1940_v36, %v511_v2  ;;  %731 = vperm.xlu1 %1571, %v612_v9   ;;  %v651_v33 = vsel %vm650_vm8, %v2124_v62, %v649_v15  ;;  %v2247_v36 = vadd.f32 1e-08, %v573_v50 }
 0x266   :  { %v637_v14 = vsel %vm636_vm10, %v2137_v10, %v635_v3  ;;  %vm657_vm7 = vcmp.eq.f32.partialorder %v2160_v59, inf  ;;  %v614_v57 = vmul.f32 %v1587_v54, %v2143_v25  ;;  %vm615_vm12 = vcmp.eq.f32.partialorder %v2143_v25, inf }
 0x267   :  { %v559_v44 = vmul.f32 %v2235_v27, %v2235_v27  ;;  %v2255_v7 = vadd.f32 1e-08, %v571_v63  ;;  %v640_v17 = vsel %vm638_vm11, %v639_v20, %v637_v14  ;;  %v654_v37 = vsel %vm652_vm9, %v653_v53, %v651_v33 }
 0x268   :  { %v1589_v8 = vpop.eup %1588  ;;  %743 = vperm.xlu0 %1570, %v640_v17   ;;  %1592 = vrsqrt.f32 %v2227_v48  ;;  %v2266_v42 = vadd.f32 1e-08, %v574_v18  ;;  %v660_v10 = vand.u32 2147483648, %v2160_v59  ;;  %v616_v43 = vsel %vm615_vm12, %v2143_v25, %v614_v57 }
 0x269   :  { %v575_v26 = vadd.f32 %v559_v44, %v2114_v34  ;;  %v656_v28 = vmul.f32 %v1589_v8, %v2160_v59  ;;  %749 = vperm.xlu1 %1571, %v654_v37   ;;  %1594 = vrsqrt.f32 %v2240_v23  ;;  %vm659_vm13 = vcmp.eq.f32.partialorder %v2160_v59, 0.0 }
 0x26a   :  { %v618_v62 = vand.u32 2147483648, %v2143_v25  ;;  %vm617_vm14 = vcmp.eq.f32.partialorder %v2143_v25, 0.0  ;;  %1596 = vrsqrt.f32 %v2247_v36  ;;  %vm643_vm15 = vcmp.eq.f32.partialorder %v2212_v47, inf }
 0x26b   :  { %v2271_v30 = vadd.f32 1e-08, %v575_v26  ;;  %v658_v34 = vsel %vm657_vm7, %v2160_v59, %v656_v28  ;;  %1598 = vrsqrt.f32 %v2255_v7  ;;  %v646_v59 = vand.u32 2147483648, %v2212_v47 }
 0x26c   :  { %v661_v53 = vsel %vm659_vm13, %v660_v10, %v658_v34  ;;  %v619_v24 = vsel %vm617_vm14, %v618_v62, %v616_v43  ;;  %1600 = vrsqrt.f32 %v2266_v42  ;;  %vm645_vm0 = vcmp.eq.f32.partialorder %v2212_v47, 0.0  ;;  %v704_v62 = vld [vmem:[#allocation7] sm:$0xff] }
 0x26d   :  { %752 = vperm.xlu0 %1570, %v661_v53   ;;  %734 = vperm.xlu1 %1571, %v619_v24   ;;  %1602 = vrsqrt.f32 %v2271_v30  ;;  %vm664_vm8 = vcmp.eq.f32.partialorder %v2227_v48, inf  ;;  %v667_v4 = vand.u32 2147483648, %v2227_v48  ;;  %vm666_vm9 = vcmp.eq.f32.partialorder %v2227_v48, 0.0  ;;  %v705_v53 = vld [vmem:[#allocation7 + $0x8] sm:$0xff] }
 0x26e   :  { %v1591_v13 = vpop.eup %1590  ;;  %vm678_vm10 = vcmp.eq.f32.partialorder %v2240_v23, inf  ;;  %vm680_vm11 = vcmp.eq.f32.partialorder %v2240_v23, 0.0  ;;  %vm685_vm7 = vcmp.eq.f32.partialorder %v2247_v36, inf  ;;  %v688_v33 = vand.u32 2147483648, %v2247_v36 }
 0x26f   :  { %v642_v31 = vmul.f32 %v1591_v13, %v2212_v47  ;;  %vm671_vm12 = vcmp.eq.f32.partialorder %v2255_v7, inf  ;;  %v674_v8 = vand.u32 2147483648, %v2255_v7  ;;  %vm687_vm13 = vcmp.eq.f32.partialorder %v2247_v36, 0.0  ;;  %v706_v13 = vld [vmem:[#allocation7 + $0x10] sm:$0xff] }
 0x270   :  { %vm673_vm14 = vcmp.eq.f32.partialorder %v2255_v7, 0.0  ;;  %v702_v43 = vand.u32 2147483648, %v2271_v30  ;;  %v1548_v24 = vpack.c.bf16 %v705_v53, %v704_v62 }
 0x271   :  { %v644_v25 = vsel %vm643_vm15, %v2212_v47, %v642_v31  ;;  %v681_v47 = vand.u32 2147483648, %v2240_v23  ;;  %vm692_vm15 = vcmp.eq.f32.partialorder %v2266_v42, inf  ;;  %v707_v31 = vld [vmem:[#allocation7 + $0x18] sm:$0xff] }
 0x272   :  { %v1593_v19 = vpop.eup %1592  ;;  %v647_v46 = vsel %vm645_vm0, %v646_v59, %v644_v25  ;;  %vm699_vm0 = vcmp.eq.f32.partialorder %v2271_v30, inf  ;;  %1549 = vmatpush3.bf16.msra.mxu1 %v1548_v24  ;;  %v1551_v59 = vpack.c.bf16 %v707_v31, %v706_v13 }
 0x273   :  { %v1595_v50 = vpop.eup %1594  ;;  %v663_v32 = vmul.f32 %v1593_v19, %v2227_v48  ;;  %746 = vperm.xlu0 %1570, %v647_v46   ;;  %v2485_v19 = vmov 0.0|0.0  }
 0x274   :  { %v677_v2 = vmul.f32 %v1595_v50, %v2240_v23  ;;  %v1597_v41 = vpop.eup %1596  ;;  %1550 = vmatprep.subr.bf16.mxu1 %v2485_v19 }
 0x275   :  { %v665_v20 = vsel %vm664_vm8, %v2227_v48, %v663_v32  ;;  %v1599_v15 = vpop.eup %1598  ;;  %v684_v3 = vmul.f32 %v1597_v41, %v2247_v36  ;;  %vm701_vm8 = vcmp.eq.f32.partialorder %v2271_v30, 0.0 }
 0x276   :  { %v668_v63 = vsel %vm666_vm9, %v667_v4, %v665_v20  ;;  %v679_v9 = vsel %vm678_vm10, %v2240_v23, %v677_v2  ;;  %v1601_v54 = vpop.eup %1600  ;;  %v670_v48 = vmul.f32 %v1599_v15, %v2255_v7  ;;  %vm694_vm9 = vcmp.eq.f32.partialorder %v2266_v42, 0.0  ;;  %1552 = vmatpush3.bf16.msra.mxu1 %v1551_v59 }
 0x277   :  { %755 = vperm.xlu1 %1571, %v668_v63   ;;  %v682_v18 = vsel %vm680_vm11, %v681_v47, %v679_v9  ;;  %v1603_v44 = vpop.eup %1602  ;;  %v686_v14 = vsel %vm685_vm7, %v2247_v36, %v684_v3  ;;  %v691_v23 = vmul.f32 %v1601_v54, %v2266_v42  ;;  %v695_v36 = vand.u32 2147483648, %v2266_v42 }
 0x278   :  { %761 = vperm.xlu0 %1570, %v682_v18   ;;  %v672_v17 = vsel %vm671_vm12, %v2255_v7, %v670_v48  ;;  %v698_v57 = vmul.f32 %v1603_v44, %v2271_v30  ;;  %v689_v26 = vsel %vm687_vm13, %v688_v33, %v686_v14  ;;  %vm2486_vm10 = vcmask 261120  }
 0x279   :  { %v675_v37 = vsel %vm673_vm14, %v674_v8, %v672_v17  ;;  %v693_v28 = vsel %vm692_vm15, %v2266_v42, %v691_v23  ;;  %vm2491_vm7 = vmmov %vm2486_vm10 }
 0x27a   :  { %v700_v10 = vsel %vm699_vm0, %v2271_v30, %v698_v57  ;;  %v696_v34 = vsel %vm694_vm9, %v695_v36, %v693_v28 }
 0x27b   :  { %764 = vperm.xlu1 %1571, %v689_v26   ;;  %v703_v7 = vsel %vm701_vm8, %v702_v43, %v700_v10 }
 0x27c   :  { %758 = vperm.xlu0 %1570, %v675_v37  }
 0x27f   :  { %767 = vperm.xlu1 %1571, %v696_v34  }
 0x280   :  { %770 = vperm.xlu0 %1570, %v703_v7  }
 0x2dc   :  { %v729_v25 = vpop.permute.xlu1 %728 }
 0x2dd   :  { %v779_v18 = vrot.slane %v729_v25, %v1875_v58 }
 0x2de   :  { %v726_v50 = vpop.permute.xlu0 %725 }
 0x2df   :  { %v775_v33 = vrot.slane %v726_v50, %v1870_v55 }
 0x2e0   :  { %v738_v46 = vpop.permute.xlu1 %737 }
 0x2e1   :  { %v794_v9 = vrot.slane %v738_v46, %v1870_v55  ;;  %v780_v7 = vsel %vm235_vm1, %v779_v18, %v775_v33 }
 0x2e3   :  { %v741_v30 = vpop.permute.xlu0 %740 }
 0x2e4   :  { %v732_v32 = vpop.permute.xlu1 %731  ;;  %v798_v15 = vrot.slane %v741_v30, %v1875_v58 }
 0x2e5   :  { %v784_v8 = vrot.slane %v732_v32, %v1880_v60 }
 0x2e6   :  { %v799_v23 = vsel %vm235_vm1, %v798_v15, %v794_v9 }
 0x2e7   :  { %v744_v42 = vpop.permute.xlu0 %743  ;;  %v785_v24 = vsel %vm242_vm2, %v784_v8, %v780_v7 }
 0x2e8   :  { %v750_v4 = vpop.permute.xlu1 %749  ;;  %v803_v3 = vrot.slane %v744_v42, %v1880_v60 }
 0x2e9   :  { %v813_v17 = vrot.slane %v750_v4, %v1870_v55 }
 0x2ea   :  { %v804_v43 = vsel %vm242_vm2, %v803_v3, %v799_v23 }
 0x2ec   :  { %v753_v2 = vpop.permute.xlu0 %752  ;;  %v735_v41 = vpop.permute.xlu1 %734 }
 0x2ed   :  { %v817_v54 = vrot.slane %v753_v2, %v1875_v58  ;;  %v789_v26 = vrot.slane %v735_v41, %v1895_v5 }
 0x2ef   :  { %v818_v36 = vsel %vm235_vm1, %v817_v54, %v813_v17  ;;  %v790_v25 = vsel %vm249_vm3, %v789_v26, %v785_v24 }
 0x2f2   :  { %v747_v20 = vpop.permute.xlu0 %746 }
 0x2f3   :  { %v808_v44 = vrot.slane %v747_v20, %v1895_v5 }
 0x2f5   :  { %v809_v62 = vsel %vm249_vm3, %v808_v44, %v804_v43 }
 0x2f6   :  { %v756_v47 = vpop.permute.xlu1 %755  ;;  %v848_v30 = vsel %vm308_vm4, %v809_v62, %v790_v25  ;;  %v1038_v25 = vld [vmem:[#allocation8 + $0x10] sm:$0xff] }
 0x2f7   :  { %v762_v63 = vpop.permute.xlu0 %761  ;;  %v822_v48 = vrot.slane %v756_v47, %v1880_v60 }
 0x2f8   :  { %v832_v28 = vrot.slane %v762_v63, %v1870_v55 }
 0x2f9   :  { %v823_v34 = vsel %vm242_vm2, %v822_v48, %v818_v36 }
 0x2fa   :  { %v765_v14 = vpop.permute.xlu1 %764 }
 0x2fb   :  { %v759_v57 = vpop.permute.xlu0 %758  ;;  %v836_v37 = vrot.slane %v765_v14, %v1875_v58 }
 0x2fc   :  { %v827_v10 = vrot.slane %v759_v57, %v1895_v5 }
 0x2fd   :  { %v837_v50 = vsel %vm235_vm1, %v836_v37, %v832_v28 }
 0x2fe   :  { %v768_v53 = vpop.permute.xlu1 %767  ;;  %v828_v31 = vsel %vm249_vm3, %v827_v10, %v823_v34 }
 0x2ff   :  { %v841_v13 = vrot.slane %v768_v53, %v1880_v60  ;;  %v771_v59 = vpop.permute.xlu0 %770  ;;  %v849_v4 = vsel %vm310_vm5, %v828_v31, %v848_v30 }
 0x300   :  { %v846_v46 = vrot.slane %v771_v59, %v1895_v5  ;;  %v1036_v59 = vld [vmem:[#allocation8] sm:$0xff] }
 0x301   :  { %v842_v32 = vsel %vm242_vm2, %v841_v13, %v837_v50  ;;  %v2487_v50 = vld [vmem:[#allocation15_spill] sm:$0xff] }
 0x302   :  { %v847_v42 = vsel %vm249_vm3, %v846_v46, %v842_v32 }
 0x303   :  { %v850_v2 = vsel %vm312_vm6, %v847_v42, %v849_v4 }
 0x304   :  { %1528 = vmatmul.mubr.msk.f32.vlgmr.msra.gmra.mrb[0].mxu1 %vm2486_vm10, %v850_v2 }
 0x3d7   :  { %v919_v41 = vpop.f32.mrb[0].mxu1 }
 0x3d8   :  { %vm923_vm11 = vcmp.le.f32.partialorder %v919_v41, 1e-08  ;;  %v1529_v20 = vpop.f32.mrb[1].mxu1 }
 0x3d9   :  { %v924_v47 = vsel %vm923_vm11, 1.0, %v919_v41 }
 0x3da   :  { %1604 = vrcp.f32 %v924_v47 }
 0x3e4   :  { %v2351_v15 = vpop.eup %1604 }
 0x3e5   :  { %v931_v63 = vrot.slane %v2351_v15, %v1964_v52  ;;  %v950_v9 = vrot.slane %v2351_v15, %v1970_v56  ;;  %v969_v3 = vrot.slane %v2351_v15, %v1978_v35  ;;  %v988_v54 = vrot.slane %v2351_v15, %v1990_v11 }
 0x3e7   :  { %937 = vbcast.lane.b32.xlu0 %v931_v63, 264  ;;  %933 = vbcast.lane.b32.xlu1 %v931_v63, 256 }
 0x3eb   :  { %956 = vbcast.lane.b32.xlu0 %v950_v9, 264  ;;  %952 = vbcast.lane.b32.xlu1 %v950_v9, 256 }
 0x3ef   :  { %960 = vbcast.lane.b32.xlu0 %v950_v9, 272  ;;  %941 = vbcast.lane.b32.xlu1 %v931_v63, 272 }
 0x3f3   :  { %975 = vbcast.lane.b32.xlu0 %v969_v3, 264  ;;  %971 = vbcast.lane.b32.xlu1 %v969_v3, 256 }
 0x3f7   :  { %964 = vbcast.lane.b32.xlu0 %v950_v9, 280  ;;  %945 = vbcast.lane.b32.xlu1 %v931_v63, 280 }
 0x3fb   :  { %990 = vbcast.lane.b32.xlu0 %v988_v54, 256  ;;  %979 = vbcast.lane.b32.xlu1 %v969_v3, 272 }
 0x3ff   :  { %983 = vbcast.lane.b32.xlu0 %v969_v3, 280  ;;  %994 = vbcast.lane.b32.xlu1 %v988_v54, 264 }
 0x403   :  { %1002 = vbcast.lane.b32.xlu0 %v988_v54, 280  ;;  %998 = vbcast.lane.b32.xlu1 %v988_v54, 272 }
 0x459   :  { %v938_v18 = vpop.permute.xlu0 %937  ;;  %v934_v33 = vpop.permute.xlu1 %933 }
 0x45a   :  { %v1021_v48 = vmul.f32 %v938_v18, %v2048_v38  ;;  %v1020_v44 = vmul.f32 %v934_v33, %v2051_v39 }
 0x45c   :  { %1067 = vperm.xlu0 %1570, %v1021_v48   ;;  %1064 = vperm.xlu1 %1571, %v1020_v44  }
 0x45d   :  { %v957_v14 = vpop.permute.xlu0 %956  ;;  %v953_v8 = vpop.permute.xlu1 %952 }
 0x45e   :  { %v1025_v23 = vmul.f32 %v957_v14, %v2079_v29  ;;  %v1024_v17 = vmul.f32 %v953_v8, %v2062_v49 }
 0x460   :  { %1079 = vperm.xlu0 %1570, %v1025_v23   ;;  %1076 = vperm.xlu1 %1571, %v1024_v17  }
 0x461   :  { %v961_v57 = vpop.permute.xlu0 %960  ;;  %v942_v26 = vpop.permute.xlu1 %941 }
 0x462   :  { %v1026_v37 = vmul.f32 %v961_v57, %v2102_v1  ;;  %v1022_v28 = vmul.f32 %v942_v26, %v2065_v16 }
 0x464   :  { %1082 = vperm.xlu0 %1570, %v1026_v37   ;;  %1070 = vperm.xlu1 %1571, %v1022_v28  }
 0x465   :  { %v976_v38 = vpop.permute.xlu0 %975  ;;  %v972_v39 = vpop.permute.xlu1 %971 }
 0x466   :  { %v1029_v10 = vmul.f32 %v976_v38, %v2130_v12  ;;  %v1028_v43 = vmul.f32 %v972_v39, %v2082_v51 }
 0x468   :  { %1091 = vperm.xlu0 %1570, %v1029_v10   ;;  %1088 = vperm.xlu1 %1571, %v1028_v43  }
 0x469   :  { %v965_v29 = vpop.permute.xlu0 %964  ;;  %v946_v49 = vpop.permute.xlu1 %945 }
 0x46a   :  { %v1027_v36 = vmul.f32 %v965_v29, %v2152_v45  ;;  %v1023_v7 = vmul.f32 %v946_v49, %v2105_v61 }
 0x46c   :  { %1085 = vperm.xlu0 %1570, %v1027_v36   ;;  %1073 = vperm.xlu1 %1571, %v1023_v7  }
 0x46d   :  { %v991_v1 = vpop.permute.xlu0 %990  ;;  %v980_v16 = vpop.permute.xlu1 %979 }
 0x46e   :  { %v1032_v34 = vmul.f32 %v991_v1, %v2180_v21  ;;  %v1030_v62 = vmul.f32 %v980_v16, %v2146_v40  ;;  %v1037_v21 = vld [vmem:[#allocation8 + $0x8] sm:$0xff] }
 0x46f   :  { %v1554_v40 = vpack.c.bf16 %v1037_v21, %v1036_v59 }
 0x470   :  { %1100 = vperm.xlu0 %1570, %v1032_v34   ;;  %1094 = vperm.xlu1 %1571, %v1030_v62  }
 0x471   :  { %v984_v12 = vpop.permute.xlu0 %983  ;;  %v995_v51 = vpop.permute.xlu1 %994  ;;  %1555 = vmatpush3.bf16.msra.mxu0 %v1554_v40 }
 0x472   :  { %v1031_v53 = vmul.f32 %v984_v12, %v2206_v0  ;;  %v1033_v24 = vmul.f32 %v995_v51, %v2165_v6  ;;  %1556 = vmatprep.subr.bf16.mxu0 %v2485_v19  ;;  %v1039_v0 = vld [vmem:[#allocation8 + $0x18] sm:$0xff] }
 0x473   :  { %v1557_v6 = vpack.c.bf16 %v1039_v0, %v1038_v25  ;;  %v2490_v19 = vld [vmem:[#allocation18_spill] sm:$0xff] }
 0x474   :  { %1097 = vperm.xlu0 %1570, %v1031_v53   ;;  %1103 = vperm.xlu1 %1571, %v1033_v24  }
 0x475   :  { %v1003_v45 = vpop.permute.xlu0 %1002  ;;  %v999_v61 = vpop.permute.xlu1 %998  ;;  %1558 = vmatpush3.bf16.msra.mxu0 %v1557_v6 }
 0x476   :  { %v1035_v13 = vmul.f32 %v1003_v45, %v2235_v27  ;;  %v1034_v31 = vmul.f32 %v999_v61, %v2187_v22  ;;  %v2488_v22 = vld [vmem:[#allocation16_spill] sm:$0xff]  ;;  %v2489_v27 = vld [vmem:[#allocation17_spill] sm:$0xff] }
 0x478   :  { %1109 = vperm.xlu0 %1570, %v1035_v13   ;;  %1106 = vperm.xlu1 %1571, %v1034_v31  }
 0x47c   :  { %1350 = vbcast.lane.b32.xlu0 %v2487_v50, 256  ;;  %1354 = vbcast.lane.b32.xlu1 %v2487_v50, 264 }
 0x480   :  { %1358 = vbcast.lane.b32.xlu0 %v2487_v50, 272  ;;  %1362 = vbcast.lane.b32.xlu1 %v2487_v50, 280 }
 0x484   :  { %1369 = vbcast.lane.b32.xlu0 %v2488_v22, 256  ;;  %1373 = vbcast.lane.b32.xlu1 %v2488_v22, 264 }
 0x488   :  { %1377 = vbcast.lane.b32.xlu0 %v2488_v22, 272  ;;  %1381 = vbcast.lane.b32.xlu1 %v2488_v22, 280 }
 0x48c   :  { %1388 = vbcast.lane.b32.xlu0 %v2489_v27, 256  ;;  %1392 = vbcast.lane.b32.xlu1 %v2489_v27, 264 }
 0x490   :  { %1396 = vbcast.lane.b32.xlu0 %v2489_v27, 272  ;;  %1400 = vbcast.lane.b32.xlu1 %v2489_v27, 280 }
 0x494   :  { %1407 = vbcast.lane.b32.xlu0 %v2490_v19, 256  ;;  %1411 = vbcast.lane.b32.xlu1 %v2490_v19, 264 }
 0x498   :  { %1415 = vbcast.lane.b32.xlu0 %v2490_v19, 272  ;;  %1419 = vbcast.lane.b32.xlu1 %v2490_v19, 280 }
 0x4db   :  { %v1068_v46 = vpop.permute.xlu0 %1067  ;;  %v1065_v30 = vpop.permute.xlu1 %1064 }
 0x4dc   :  { %v1118_v54 = vrot.slane %v1068_v46, %v1875_v58  ;;  %v1114_v18 = vrot.slane %v1065_v30, %v1870_v55 }
 0x4de   :  { %v1119_v39 = vsel %vm235_vm1, %v1118_v54, %v1114_v18  ;;  %v1610_v54 = vld [vmem:[#allocation2] sm:$0xff] }
 0x4df   :  { %v1080_v32 = vpop.permute.xlu0 %1079  ;;  %v1077_v42 = vpop.permute.xlu1 %1076 }
 0x4e0   :  { %v1137_v33 = vrot.slane %v1080_v32, %v1875_v58  ;;  %v1133_v48 = vrot.slane %v1077_v42, %v1870_v55 }
 0x4e2   :  { %v1138_v10 = vsel %vm235_vm1, %v1137_v33, %v1133_v48  ;;  %v1611_v33 = vld [vmem:[#allocation2 + $0x8] sm:$0xff] }
 0x4e3   :  { %v1083_v4 = vpop.permute.xlu0 %1082  ;;  %v1071_v2 = vpop.permute.xlu1 %1070 }
 0x4e4   :  { %v1142_v44 = vrot.slane %v1083_v4, %v1880_v60  ;;  %v1123_v14 = vrot.slane %v1071_v2, %v1880_v60 }
 0x4e6   :  { %v1143_v29 = vsel %vm242_vm2, %v1142_v44, %v1138_v10  ;;  %v1124_v49 = vsel %vm242_vm2, %v1123_v14, %v1119_v39 }
 0x4e7   :  { %v1092_v41 = vpop.permute.xlu0 %1091  ;;  %v1089_v20 = vpop.permute.xlu1 %1088 }
 0x4e8   :  { %v1156_v8 = vrot.slane %v1092_v41, %v1875_v58  ;;  %v1152_v23 = vrot.slane %v1089_v20, %v1870_v55 }
 0x4ea   :  { %v1157_v36 = vsel %vm235_vm1, %v1156_v8, %v1152_v23 }
 0x4eb   :  { %v1086_v47 = vpop.permute.xlu0 %1085  ;;  %v1074_v63 = vpop.permute.xlu1 %1073 }
 0x4ec   :  { %v1147_v17 = vrot.slane %v1086_v47, %v1895_v5  ;;  %v1128_v57 = vrot.slane %v1074_v63, %v1895_v5 }
 0x4ee   :  { %v1148_v7 = vsel %vm249_vm3, %v1147_v17, %v1143_v29  ;;  %v1129_v1 = vsel %vm249_vm3, %v1128_v57, %v1124_v49  ;;  %v1612_v17 = vld [vmem:[#allocation2 + $0x10] sm:$0xff]  ;;  %v1615_v49 = vld [vmem:[#allocation2 + $0x28] sm:$0xff] }
 0x4ef   :  { %v1101_v9 = vpop.permute.xlu0 %1100  ;;  %v1095_v3 = vpop.permute.xlu1 %1094  ;;  %v1187_v45 = vsel %vm308_vm4, %v1148_v7, %v1129_v1 }
 0x4f0   :  { %v1161_v26 = vrot.slane %v1095_v3, %v1880_v60  ;;  %v1171_v16 = vrot.slane %v1101_v9, %v1870_v55 }
 0x4f2   :  { %v1162_v34 = vsel %vm242_vm2, %v1161_v26, %v1157_v36  ;;  %v1613_v26 = vld [vmem:[#allocation2 + $0x18] sm:$0xff] }
 0x4f3   :  { %v1098_v37 = vpop.permute.xlu0 %1097  ;;  %v1104_v28 = vpop.permute.xlu1 %1103 }
 0x4f4   :  { %v1166_v38 = vrot.slane %v1098_v37, %v1895_v5  ;;  %v1175_v43 = vrot.slane %v1104_v28, %v1875_v58 }
 0x4f6   :  { %v1167_v51 = vsel %vm249_vm3, %v1166_v38, %v1162_v34  ;;  %v1176_v24 = vsel %vm235_vm1, %v1175_v43, %v1171_v16  ;;  %v1614_v43 = vld [vmem:[#allocation2 + $0x20] sm:$0xff] }
 0x4f7   :  { %v1110_v62 = vpop.permute.xlu0 %1109  ;;  %v1107_v12 = vpop.permute.xlu1 %1106  ;;  %v1188_v13 = vsel %vm310_vm5, %v1167_v51, %v1187_v45  ;;  %v1617_v51 = vld [vmem:[#allocation2 + $0x38] sm:$0xff] }
 0x4f8   :  { %v1185_v58 = vrot.slane %v1110_v62, %v1895_v5  ;;  %v1180_v53 = vrot.slane %v1107_v12, %v1880_v60  ;;  %v1490_v5 = vld [vmem:[%s2468_s4] ss:$0 sm:$0xff]  ;;  %v1616_v62 = vld [vmem:[#allocation2 + $0x30] sm:$0xff]  ;;  %s1754_s4 = smov [#allocation10]  }
 0x4f9   :  { %s1474_s17 = sshll.u32 %s1754_s4, 4  ;;  %s1475_s17 = int_to_ptr.vmem [resolvable:$true] %s1474_s17 }
 0x4fa   :  { %v1181_v61 = vsel %vm242_vm2, %v1180_v53, %v1176_v24  ;;  %s1714_s18 = scalar_lea.vmem %s1475_s17, 2048  ;;  %p1719_p5 = scmp.lt.s32.totalorder %s1475_s17, %s1475_s17 }
 0x4fb   :  { %v1186_v55 = vsel %vm249_vm3, %v1185_v58, %v1181_v61  ;;  %v1355_v46 = vpop.permute.xlu1 %1354  ;;  %p1715_p4 = scmp.ne.s32.totalorder %s1475_s17, %s1714_s18  ;;  %p1720_p6 = scmp.lt.s32.totalorder %s1714_s18, %s1714_s18 }
 0x4fc   :  { %v1189_v31 = vsel %vm312_vm6, %v1186_v55, %v1188_v13  ;;  %v1422_v48 = vsub.f32 %v1611_v33, %v1355_v46  ;;  %v1618_v13 = vld [vmem:[#allocation2 + $0x40] sm:$0xff] }
 0x4fd   :  { %1539 = vmatmul.mubr.msk.f32.vlgmr.msra.gmra.mrb[2].mxu0 %vm2491_vm7, %v1189_v31  ;;  %v1619_v31 = vld [vmem:[#allocation2 + $0x48] sm:$0xff]  ;;  %p1721_p7 = por %p1720_p6, %p1719_p5 }
 0x4ff   :  { %p1722_p8 = pnand %p1721_p7, %p1715_p4 }
 0x5d0   :  { %v1258_v59 = vpop.f32.mrb[2].mxu0 }
 0x5d1   :  { %v1259_v60 = vadd.f32 %v1490_v5, %v1258_v59  ;;  %v1540_v21 = vpop.f32.mrb[3].mxu0 }
 0x5d3   :  { %v1492_v40 = vmul.f32 -1.442695, %v1259_v60 }
 0x5d5   :  { %1606 = vpow2.f32 %v1492_v40 }
 0x5df   :  { %v1607_v25 = vpop.eup %1606 }
 0x5e0   :  { %v1265_v0 = vadd.f32 1.0, %v1607_v25  ;;  %v1620_v25 = vld [vmem:[#allocation2 + $0x50] sm:$0xff] }
 0x5e2   :  { %1608 = vrcp.f32 %v1265_v0 }
 0x5ec   :  { %v1609_v50 = vpop.eup %1608 }
 0x5ed   :  { %v1268_v6 = vmul.f32 %v1609_v50, %v2351_v15  ;;  %v1621_v50 = vld [vmem:[#allocation2 + $0x58] sm:$0xff] }
 0x5ef   :  { %v1272_v22 = vrot.slane %v1268_v6, %v1964_v52  ;;  %v1291_v27 = vrot.slane %v1268_v6, %v1970_v56  ;;  %v1310_v19 = vrot.slane %v1268_v6, %v1978_v35  ;;  %v1329_v15 = vrot.slane %v1268_v6, %v1990_v11  ;;  %v1351_v52 = vpop.permute.xlu0 %1350  ;;  %v1363_v56 = vpop.permute.xlu1 %1362 }
 0x5f0   :  { %v1421_v18 = vsub.f32 %v1610_v54, %v1351_v52  ;;  %v1424_v37 = vsub.f32 %v1613_v26, %v1363_v56  ;;  %v1622_v52 = vld [vmem:[#allocation2 + $0x60] sm:$0xff] }
 0x5f1   :  { %1278 = vbcast.lane.b32.xlu0 %v1272_v22, 264  ;;  %1274 = vbcast.lane.b32.xlu1 %v1272_v22, 256 }
 0x5f3   :  { %v1359_v30 = vpop.permute.xlu0 %1358  ;;  %v1374_v42 = vpop.permute.xlu1 %1373 }
 0x5f4   :  { %v1423_v57 = vsub.f32 %v1612_v17, %v1359_v30  ;;  %v1426_v36 = vsub.f32 %v1615_v49, %v1374_v42  ;;  %v1623_v30 = vld [vmem:[#allocation2 + $0x68] sm:$0xff] }
 0x5f5   :  { %1286 = vbcast.lane.b32.xlu0 %v1272_v22, 280  ;;  %1282 = vbcast.lane.b32.xlu1 %v1272_v22, 272 }
 0x5f7   :  { %v1370_v32 = vpop.permute.xlu0 %1369  ;;  %v1382_v2 = vpop.permute.xlu1 %1381 }
 0x5f8   :  { %v1425_v29 = vsub.f32 %v1614_v43, %v1370_v32  ;;  %v1428_v58 = vsub.f32 %v1617_v51, %v1382_v2 }
 0x5f9   :  { %1297 = vbcast.lane.b32.xlu0 %v1291_v27, 264  ;;  %1293 = vbcast.lane.b32.xlu1 %v1291_v27, 256 }
 0x5fb   :  { %v1378_v4 = vpop.permute.xlu0 %1377  ;;  %v1393_v35 = vpop.permute.xlu1 %1392 }
 0x5fc   :  { %v1427_v12 = vsub.f32 %v1616_v62, %v1378_v4  ;;  %v1430_v5 = vsub.f32 %v1619_v31, %v1393_v35 }
 0x5fd   :  { %1305 = vbcast.lane.b32.xlu0 %v1291_v27, 280  ;;  %1301 = vbcast.lane.b32.xlu1 %v1291_v27, 272 }
 0x5ff   :  { %v1389_v41 = vpop.permute.xlu0 %1388  ;;  %v1401_v47 = vpop.permute.xlu1 %1400 }
 0x600   :  { %v1429_v55 = vsub.f32 %v1618_v13, %v1389_v41  ;;  %v1432_v6 = vsub.f32 %v1621_v50, %v1401_v47  ;;  %v1624_v41 = vld [vmem:[#allocation2 + $0x70] sm:$0xff] }
 0x601   :  { %1316 = vbcast.lane.b32.xlu0 %v1310_v19, 264  ;;  %1312 = vbcast.lane.b32.xlu1 %v1310_v19, 256 }
 0x603   :  { %v2434_v20 = vpop.permute.xlu0 %1396  ;;  %v2438_v11 = vpop.permute.xlu1 %1411 }
 0x604   :  { %v1431_v0 = vsub.f32 %v1620_v25, %v2434_v20  ;;  %v1434_v56 = vsub.f32 %v1623_v30, %v2438_v11  ;;  %v1625_v20 = vld [vmem:[#allocation2 + $0x78] sm:$0xff] }
 0x605   :  { %1324 = vbcast.lane.b32.xlu0 %v1310_v19, 280  ;;  %1320 = vbcast.lane.b32.xlu1 %v1310_v19, 272 }
 0x607   :  { %v2436_v63 = vpop.permute.xlu0 %1407  ;;  %v2442_v3 = vpop.permute.xlu1 %1419 }
 0x608   :  { %v1433_v46 = vsub.f32 %v1622_v52, %v2436_v63  ;;  %v1436_v47 = vsub.f32 %v1625_v20, %v2442_v3 }
 0x609   :  { %1335 = vbcast.lane.b32.xlu0 %v1329_v15, 264  ;;  %1331 = vbcast.lane.b32.xlu1 %v1329_v15, 256 }
 0x60b   :  { %v2440_v9 = vpop.permute.xlu0 %1415 }
 0x60c   :  { %v1435_v35 = vsub.f32 %v1624_v41, %v2440_v9 }
 0x60d   :  { %1343 = vbcast.lane.b32.xlu0 %v1329_v15, 280  ;;  %1339 = vbcast.lane.b32.xlu1 %v1329_v15, 272 }
 0x663   :  { %v1279_v44 = vpop.permute.xlu0 %1278  ;;  %v1275_v14 = vpop.permute.xlu1 %1274 }
 0x664   :  { %v1438_v8 = vmul.f32 %v1422_v48, %v1279_v44  ;;  %v1437_v23 = vmul.f32 %v1421_v18, %v1275_v14 }
 0x666   :  { %1454 = vst [vmem:[#allocation10 + $0x8] sm:$0xff] %v1438_v8  ;;  %1453 = vst [vmem:[#allocation10] sm:$0xff] %v1437_v23 }
 0x667   :  { %v1287_v28 = vpop.permute.xlu0 %1286  ;;  %v1283_v38 = vpop.permute.xlu1 %1282 }
 0x668   :  { %v1440_v39 = vmul.f32 %v1424_v37, %v1287_v28  ;;  %v1439_v10 = vmul.f32 %v1423_v57, %v1283_v38 }
 0x66a   :  { %1456 = vst [vmem:[#allocation10 + $0x18] sm:$0xff] %v1440_v39  ;;  %1455 = vst [vmem:[#allocation10 + $0x10] sm:$0xff] %v1439_v10 }
 0x66b   :  { %v1298_v7 = vpop.permute.xlu0 %1297  ;;  %v1294_v1 = vpop.permute.xlu1 %1293 }
 0x66c   :  { %v1442_v16 = vmul.f32 %v1426_v36, %v1298_v7  ;;  %v1441_v34 = vmul.f32 %v1425_v29, %v1294_v1 }
 0x66e   :  { %1458 = vst [vmem:[#allocation10 + $0x28] sm:$0xff] %v1442_v16  ;;  %1457 = vst [vmem:[#allocation10 + $0x20] sm:$0xff] %v1441_v34 }
 0x66f   :  { %v1306_v53 = vpop.permute.xlu0 %1305  ;;  %v1302_v24 = vpop.permute.xlu1 %1301 }
 0x670   :  { %v1444_v45 = vmul.f32 %v1428_v58, %v1306_v53  ;;  %v1443_v61 = vmul.f32 %v1427_v12, %v1302_v24 }
 0x672   :  { %1460 = vst [vmem:[#allocation10 + $0x38] sm:$0xff] %v1444_v45  ;;  %1459 = vst [vmem:[#allocation10 + $0x30] sm:$0xff] %v1443_v61 }
 0x673   :  { %v1317_v59 = vpop.permute.xlu0 %1316  ;;  %v1313_v60 = vpop.permute.xlu1 %1312 }
 0x674   :  { %v1446_v21 = vmul.f32 %v1430_v5, %v1317_v59  ;;  %v1445_v40 = vmul.f32 %v1429_v55, %v1313_v60 }
 0x676   :  { %1462 = vst [vmem:[#allocation10 + $0x48] sm:$0xff] %v1446_v21  ;;  %1461 = vst [vmem:[#allocation10 + $0x40] sm:$0xff] %v1445_v40 }
 0x677   :  { %v1325_v22 = vpop.permute.xlu0 %1324  ;;  %v1321_v27 = vpop.permute.xlu1 %1320 }
 0x678   :  { %v1448_v19 = vmul.f32 %v1432_v6, %v1325_v22  ;;  %v1447_v15 = vmul.f32 %v1431_v0, %v1321_v27 }
 0x67a   :  { %1464 = vst [vmem:[#allocation10 + $0x58] sm:$0xff] %v1448_v19  ;;  %1463 = vst [vmem:[#allocation10 + $0x50] sm:$0xff] %v1447_v15 }
 0x67b   :  { %v1336_v32 = vpop.permute.xlu0 %1335  ;;  %v1332_v42 = vpop.permute.xlu1 %1331 }
 0x67c   :  { %v1450_v4 = vmul.f32 %v1434_v56, %v1336_v32  ;;  %v1449_v2 = vmul.f32 %v1433_v46, %v1332_v42 }
 0x67e   :  { %1466 = vst [vmem:[#allocation10 + $0x68] sm:$0xff] %v1450_v4  ;;  %1465 = vst [vmem:[#allocation10 + $0x60] sm:$0xff] %v1449_v2 }
 0x67f   :  { %v1344_v63 = vpop.permute.xlu0 %1343  ;;  %v1340_v54 = vpop.permute.xlu1 %1339 }
 0x680   :  { %v1452_v18 = vmul.f32 %v1436_v47, %v1344_v63  ;;  %v1451_v11 = vmul.f32 %v1435_v35, %v1340_v54 }
 0x682   :  { %1468 = vst [vmem:[#allocation10 + $0x78] sm:$0xff] %v1452_v18  ;;  %1467 = vst [vmem:[#allocation10 + $0x70] sm:$0xff] %v1451_v11 }
 0x683   :  { %1725 = shalt.err (!%p1722_p8)
}
 0x684   :  { %s1726_s22 = scalar_lea.hbm %s2469_s5, 2048 }
 0x685   :  { %p1727_p9 = scmp.ne.s32.totalorder %s2469_s5, %s1726_s22  ;;  %p1730_p10 = scmp.lt.u32.totalorder %s1726_s22, %s2469_s5 }
 0x687   :  { %p1732_p11 = pnand %p1730_p10, %p1727_p9 }
 0x689   :  { %1735 = shalt.err (!%p1732_p11)
}
 0x68a   :  { %1480 = dma.vmem_to_hbm [thread:$0]  %s1475_s17, 2048, %s2469_s5, [#allocation4], %s1746_s30, %s1746_s30, %s1747_s6  }
 0x68b   :  { %1742 = dma.done.wait [#allocation4], 2048  }
 0x68c   :  { %1743 = vsyncadd [#allocation4], 4294965248 }
 0x68d   :  { %1484 = vsyncpa [#allocation3], 1 }
 0x68e   :  { %1485 = vsyncpa [#allocation6], 1 }
 0x68f   :  { %1486 = vsyncpa [#allocation9], 1 }
 0x690   :  { %1487 = vsyncpa [#allocation4], 1 }

</bundles_post_ra>
